<compile_context>
chip_gen: v6e
topology: v6e:2x2x1
jax: 0.10.0
libtpu: 0.0.40
codegen_flags: <defaults>
</compile_context>

<pallas_src>
import jax
import jax.numpy as jnp
from jax.experimental import pallas as pl
from jax.experimental.pallas import tpu as pltpu

# ---- model hyperparameters (small, consistent with the module) ----
VOCAB_SIZE   = 50            # nn_param.vocab_size
EMBED_DIM    = 32            # nn_param.embedding_dim
MAX_WORDS    = 16            # nn_param.max_words
CLASS_NUM    = 4             # nn_param.class_num
OUT_CHANNELS = 256           # fixed in the module
KERNEL_SIZES = (2, 3, 4, 5)  # h in range(2, 6)
BATCH        = 2

H_MAX    = max(KERNEL_SIZES)                       # 5 window offsets
T_PAD    = MAX_WORDS                               # 16 conv time positions (sublane-aligned)
L_PAD    = ((T_PAD + H_MAX - 1 + 7) // 8) * 8      # 24 padded token positions (mult. of 8)
K_DIM    = H_MAX * EMBED_DIM                       # 160 fused unfold width
N_CONV   = OUT_CHANNELS * len(KERNEL_SIZES)        # 1024
N_FC_PAD = 128                                     # lane-dense logits width
V_PAD    = 64                                      # vocab rows padded to a clean tile
SENTINEL = V_PAD - 1                               # pad-token id -> zero folded-weight row


def textcnn_kernel(tok_ref, mconv_ref, bc_ref, mask_ref, fw_ref, fb_ref, out_ref):
    """Fused: one-hot embed -> 4 conv branches (5 shifted GEMMs) -> ReLU -> masked
    max-pool over time -> FC.  One grid step handles a batch tile."""
    bt = out_ref.shape[0]
    rows = bt * T_PAD

    tok = tok_ref[...].reshape(bt, L_PAD, 1)                       # int32 ids (pads = SENTINEL)
    lane_v = jax.lax.broadcasted_iota(jnp.int32, (rows, V_PAD), 1)

    # Conv for every branch at once:  y[b,t,:] = sum_k M_k[tok[b, t+k], :]
    # where M_k already folds embedding @ conv-weight (zero rows for k >= h and pads).
    acc = jnp.zeros((rows, N_CONV), jnp.float32)
    for k in range(H_MAX):                                         # 5 unrolled window offsets
        tok_k = tok[:, k:k + T_PAD, :].reshape(rows, 1)
        onehot = (tok_k == lane_v).astype(jnp.bfloat16)            # exact 0/1 one-hot rows
        acc = acc + jnp.dot(onehot, mconv_ref[k * V_PAD:(k + 1) * V_PAD, :],
                            preferred_element_type=jnp.float32)

    y = jnp.maximum(acc + bc_ref[...], 0.0).reshape(bt, T_PAD, N_CONV)
    y = y * mask_ref[...]                                          # precomputed validity mask
    feat = jnp.max(y, axis=1)                                      # max-pool over time (bt, 1024)

    # TODO(synk): nn.Dropout(0.5) is identity in eval mode; training-mode dropout omitted.
    out_ref[...] = jnp.dot(feat, fw_ref[...],
                           preferred_element_type=jnp.float32) + fb_ref[...]


def pack_params(params):
    """One-time packing of the module's weights into kernel-friendly operands."""
    V1 = VOCAB_SIZE + 1
    emb = jnp.pad(params["embedding"], ((0, V_PAD - V1), (0, 0)))        # (64, 32) f32, zero pad rows

    # Fused conv weight: rows k*E + c hold w[n, c, k], zero rows for k >= h per branch.
    wblocks, bblocks = [], []
    for h in KERNEL_SIZES:
        w = params[f"conv{h}_w"]                                         # (256, E, h)
        wm = jnp.transpose(w, (2, 1, 0)).reshape(h * EMBED_DIM, OUT_CHANNELS)
        wblocks.append(jnp.pad(wm, ((0, K_DIM - h * EMBED_DIM), (0, 0))))
        bblocks.append(params[f"conv{h}_b"])
    w_conv = jnp.concatenate(wblocks, axis=1)                            # (160, 1024) f32

    # Fold the embedding into the conv weight: one (64, 1024) table per window offset.
    mconv = jnp.concatenate(
        [emb @ w_conv[k * EMBED_DIM:(k + 1) * EMBED_DIM, :] for k in range(H_MAX)],
        axis=0).astype(jnp.bfloat16)                                     # (320, 1024) bf16
    b_conv = jnp.concatenate(bblocks).reshape(1, N_CONV).astype(jnp.float32)

    # Validity mask: branch = col // 256, h = 2 + branch, valid iff t <= MAX_WORDS - h.
    t = jnp.arange(T_PAD)[:, None]
    c = jnp.arange(N_CONV)[None, :]
    mask = (t <= (MAX_WORDS - 2 - c // OUT_CHANNELS)).astype(jnp.float32)  # (16, 1024)

    # Lane-dense FC, kept in f32 (no extra rounding on the classifier).
    fw = jnp.pad(params["fc_w"].T, ((0, 0), (0, N_FC_PAD - CLASS_NUM))).astype(jnp.float32)
    fb = jnp.pad(params["fc_b"].reshape(1, CLASS_NUM),
                 ((0, 0), (0, N_FC_PAD - CLASS_NUM))).astype(jnp.float32)

    return {"mconv": mconv, "b_conv": b_conv, "mask": mask, "fw": fw, "fb": fb}


def _pick_batch_tile(B):
    """>= 2 grid steps when possible (both v7x TCs) with MXU-filling row counts."""
    if B < 8 or B % 8 != 0:
        return B                      # tiny / ragged batch: single grid step
    for bt in (64, 32, 16):           # rows_tile = bt*16 in [256, 1024]
        if B % bt == 0 and B // bt >= 2:
            return bt
    if B // 8 >= 2:
        return 8                      # rows_tile = 128 (v5e MXU fill minimum)
    return B


def textcnn2_forward(tokens, packed):
    """tokens: int32 (B, MAX_WORDS). Returns (B, CLASS_NUM) float32 logits."""
    B, L = tokens.shape
    assert L == MAX_WORDS

    # Only per-call glue: pad tokens to 24 positions (sentinel id -> zero rows) and
    # lay them out one-id-per-sublane for the in-kernel one-hot build.
    tok = jnp.pad(tokens.astype(jnp.int32), ((0, 0), (0, L_PAD - L)),
                  constant_values=SENTINEL).reshape(B * L_PAD, 1)

    bt = _pick_batch_tile(B)
    flops = 2 * B * T_PAD * (H_MAX * V_PAD) * N_CONV + 2 * B * N_CONV * N_FC_PAD
    bytes_accessed = (tok.size * 4 + packed["mconv"].size * 2 +
                      4 * (packed["b_conv"].size + packed["mask"].size +
                           packed["fw"].size + packed["fb"].size) +
                      4 * B * N_FC_PAD)

    out = pl.pallas_call(
        textcnn_kernel,
        out_shape=jax.ShapeDtypeStruct((B, N_FC_PAD), jnp.float32),
        grid=(B // bt,),
        in_specs=[
            pl.BlockSpec((bt * L_PAD, 1), lambda i: (i, 0)),          # token ids for this tile
            pl.BlockSpec((H_MAX * V_PAD, N_CONV), lambda i: (0, 0)),  # folded emb@conv tables (resident)
            pl.BlockSpec((1, N_CONV), lambda i: (0, 0)),              # fused conv bias
            pl.BlockSpec((T_PAD, N_CONV), lambda i: (0, 0)),          # precomputed validity mask
            pl.BlockSpec((N_CONV, N_FC_PAD), lambda i: (0, 0)),       # fc weight (lane-padded, f32)
            pl.BlockSpec((1, N_FC_PAD), lambda i: (0, 0)),            # fc bias (lane-padded)
        ],
        out_specs=pl.BlockSpec((bt, N_FC_PAD), lambda i: (i, 0)),
        compiler_params=pltpu.CompilerParams(dimension_semantics=("parallel",)),
        cost_estimate=pl.CostEstimate(flops=int(flops), transcendentals=0,
                                      bytes_accessed=int(bytes_accessed)),
    )(tok, packed["mconv"], packed["b_conv"], packed["mask"], packed["fw"], packed["fb"])

    return out[:, :CLASS_NUM]


def make_params(key):
    ks = jax.random.split(key, 12)
    p = {
        "embedding": 0.05 * jax.random.normal(ks[0], (VOCAB_SIZE + 1, EMBED_DIM), jnp.float32),
        "fc_w": 0.05 * jax.random.normal(ks[1], (CLASS_NUM, OUT_CHANNELS * len(KERNEL_SIZES)), jnp.float32),
        "fc_b": 0.05 * jax.random.normal(ks[2], (CLASS_NUM,), jnp.float32),
    }
    for i, h in enumerate(KERNEL_SIZES):
        p[f"conv{h}_w"] = 0.05 * jax.random.normal(ks[3 + 2 * i], (OUT_CHANNELS, EMBED_DIM, h), jnp.float32)
        p[f"conv{h}_b"] = 0.05 * jax.random.normal(ks[4 + 2 * i], (OUT_CHANNELS,), jnp.float32)
    return p


def reference_forward(tokens, params):
    """Pure-JAX f32 reference (lax.conv) mirroring the PyTorch NCW semantics."""
    emb = jnp.take(params["embedding"], tokens, axis=0)          # (B, L, E)
    x = jnp.transpose(emb, (0, 2, 1))                            # (B, E, L)  == permute(0,2,1)
    feats = []
    for h in KERNEL_SIZES:
        w = params[f"conv{h}_w"]                                 # (256, E, h)
        y = jax.lax.conv_general_dilated(
            x, w, window_strides=(1,), padding="VALID",
            dimension_numbers=("NCH", "OIH", "NCH"))
        y = y + params[f"conv{h}_b"][None, :, None]
        y = jnp.maximum(y, 0.0)
        feats.append(jnp.max(y, axis=-1))                        # maxpool over full valid length
    feat = jnp.concatenate(feats, axis=1)                        # (B, 1024)
    return feat @ params["fc_w"].T + params["fc_b"]


if __name__ == "__main__":
    key = jax.random.PRNGKey(0)
    pkey, tkey = jax.random.split(key)
    params = make_params(pkey)
    packed = pack_params(params)                                 # one-time weight packing
    tokens = jax.random.randint(tkey, (BATCH, MAX_WORDS), 0, VOCAB_SIZE + 1, dtype=jnp.int32)

    fwd = jax.jit(textcnn2_forward)
    out = fwd(tokens, packed)
    out = jax.block_until_ready(out)

    ref = reference_forward(tokens, params)
    assert out.shape == (BATCH, CLASS_NUM)
    # Folded emb@conv tables are bf16 on the MXU -> looser tolerance vs the f32 reference.
    assert jnp.allclose(out, ref, atol=2e-2, rtol=2e-2), "mismatch vs JAX reference"

    print("KERNEL_OK")
</pallas_src>

<mosaic_0001>
module attributes {stable_mosaic.version = 11 : i64} {
  func.func @textcnn_kernel(%arg0: i32, %arg1: memref<48x1xi32, #tpu.memory_space<vmem>>, %arg2: memref<320x1024xbf16, #tpu.memory_space<vmem>>, %arg3: memref<1x1024xf32, #tpu.memory_space<vmem>>, %arg4: memref<16x1024xf32, #tpu.memory_space<vmem>>, %arg5: memref<1024x128xf32, #tpu.memory_space<vmem>>, %arg6: memref<1x128xf32, #tpu.memory_space<vmem>>, %arg7: memref<2x128xf32, #tpu.memory_space<vmem>>) attributes {dimension_semantics = [#tpu.dimension_semantics<parallel>], iteration_bounds = array<i64: 1>, scalar_prefetch = 0 : i64, scratch_operands = 0 : i64, tpu.core_type = #tpu.core_type<tc>, window_params = [{transform_indices = @transform_0, window_bounds = array<i64: 48, 1>}, {pipeline_mode = #tpu.pipeline_mode<synchronous>, transform_indices = @transform_1, window_bounds = array<i64: 320, 1024>}, {pipeline_mode = #tpu.pipeline_mode<synchronous>, transform_indices = @transform_2, window_bounds = array<i64: 1, 1024>}, {pipeline_mode = #tpu.pipeline_mode<synchronous>, transform_indices = @transform_3, window_bounds = array<i64: 16, 1024>}, {pipeline_mode = #tpu.pipeline_mode<synchronous>, transform_indices = @transform_4, window_bounds = array<i64: 1024, 128>}, {pipeline_mode = #tpu.pipeline_mode<synchronous>, transform_indices = @transform_5, window_bounds = array<i64: 1, 128>}, {transform_indices = @transform_6, window_bounds = array<i64: 2, 128>}]} {
    %c0 = arith.constant 0 : index
    %c0_0 = arith.constant 0 : index
    %0 = vector.load %arg1[%c0, %c0_0] : memref<48x1xi32, #tpu.memory_space<vmem>>, vector<48x1xi32>
    %1 = vector.shape_cast %0 : vector<48x1xi32> to vector<2x24x1xi32>
    %2 = tpu.iota {dimensions = array<i32: 1>} : vector<32x64xi32>
    %cst = arith.constant 0.000000e+00 : f32
    %3 = vector.broadcast %cst : f32 to vector<32x1024xf32>
    %4 = vector.extract_strided_slice %1 {offsets = [0, 0, 0], sizes = [2, 16, 1], strides = [1, 1, 1]} : vector<2x24x1xi32> to vector<2x16x1xi32>
    %5 = vector.shape_cast %4 : vector<2x16x1xi32> to vector<32x1xi32>
    %6 = vector.broadcast %5 : vector<32x1xi32> to vector<32x64xi32>
    %7 = arith.cmpi eq, %6, %2 : vector<32x64xi32>
    %8 = arith.extui %7 : vector<32x64xi1> to vector<32x64xi32>
    %9 = arith.sitofp %8 : vector<32x64xi32> to vector<32x64xf32>
    %10 = arith.truncf %9 : vector<32x64xf32> to vector<32x64xbf16>
    %c0_1 = arith.constant 0 : index
    %c0_2 = arith.constant 0 : index
    %11 = vector.load %arg2[%c0_1, %c0_2] : memref<320x1024xbf16, #tpu.memory_space<vmem>>, vector<64x1024xbf16>
    %cst_3 = arith.constant dense<0.000000e+00> : vector<32x1024xf32>
    %12 = tpu.matmul %10, %11, %cst_3 {dimension_numbers = #tpu.dot_dimension_numbers<[1], [0], [0], [1], [0, 0, 1, 1], [], []>} : vector<32x64xbf16>, vector<64x1024xbf16>, vector<32x1024xf32> -> vector<32x1024xf32>
    %13 = arith.addf %3, %12 : vector<32x1024xf32>
    %14 = vector.extract_strided_slice %1 {offsets = [0, 1, 0], sizes = [2, 16, 1], strides = [1, 1, 1]} : vector<2x24x1xi32> to vector<2x16x1xi32>
    %15 = vector.shape_cast %14 : vector<2x16x1xi32> to vector<32x1xi32>
    %16 = vector.broadcast %15 : vector<32x1xi32> to vector<32x64xi32>
    %17 = arith.cmpi eq, %16, %2 : vector<32x64xi32>
    %18 = arith.extui %17 : vector<32x64xi1> to vector<32x64xi32>
    %19 = arith.sitofp %18 : vector<32x64xi32> to vector<32x64xf32>
    %20 = arith.truncf %19 : vector<32x64xf32> to vector<32x64xbf16>
    %c64 = arith.constant 64 : index
    %c0_4 = arith.constant 0 : index
    %21 = vector.load %arg2[%c64, %c0_4] : memref<320x1024xbf16, #tpu.memory_space<vmem>>, vector<64x1024xbf16>
    %cst_5 = arith.constant dense<0.000000e+00> : vector<32x1024xf32>
    %22 = tpu.matmul %20, %21, %cst_5 {dimension_numbers = #tpu.dot_dimension_numbers<[1], [0], [0], [1], [0, 0, 1, 1], [], []>} : vector<32x64xbf16>, vector<64x1024xbf16>, vector<32x1024xf32> -> vector<32x1024xf32>
    %23 = arith.addf %13, %22 : vector<32x1024xf32>
    %24 = vector.extract_strided_slice %1 {offsets = [0, 2, 0], sizes = [2, 16, 1], strides = [1, 1, 1]} : vector<2x24x1xi32> to vector<2x16x1xi32>
    %25 = vector.shape_cast %24 : vector<2x16x1xi32> to vector<32x1xi32>
    %26 = vector.broadcast %25 : vector<32x1xi32> to vector<32x64xi32>
    %27 = arith.cmpi eq, %26, %2 : vector<32x64xi32>
    %28 = arith.extui %27 : vector<32x64xi1> to vector<32x64xi32>
    %29 = arith.sitofp %28 : vector<32x64xi32> to vector<32x64xf32>
    %30 = arith.truncf %29 : vector<32x64xf32> to vector<32x64xbf16>
    %c128 = arith.constant 128 : index
    %c0_6 = arith.constant 0 : index
    %31 = vector.load %arg2[%c128, %c0_6] : memref<320x1024xbf16, #tpu.memory_space<vmem>>, vector<64x1024xbf16>
    %cst_7 = arith.constant dense<0.000000e+00> : vector<32x1024xf32>
    %32 = tpu.matmul %30, %31, %cst_7 {dimension_numbers = #tpu.dot_dimension_numbers<[1], [0], [0], [1], [0, 0, 1, 1], [], []>} : vector<32x64xbf16>, vector<64x1024xbf16>, vector<32x1024xf32> -> vector<32x1024xf32>
    %33 = arith.addf %23, %32 : vector<32x1024xf32>
    %34 = vector.extract_strided_slice %1 {offsets = [0, 3, 0], sizes = [2, 16, 1], strides = [1, 1, 1]} : vector<2x24x1xi32> to vector<2x16x1xi32>
    %35 = vector.shape_cast %34 : vector<2x16x1xi32> to vector<32x1xi32>
    %36 = vector.broadcast %35 : vector<32x1xi32> to vector<32x64xi32>
    %37 = arith.cmpi eq, %36, %2 : vector<32x64xi32>
    %38 = arith.extui %37 : vector<32x64xi1> to vector<32x64xi32>
    %39 = arith.sitofp %38 : vector<32x64xi32> to vector<32x64xf32>
    %40 = arith.truncf %39 : vector<32x64xf32> to vector<32x64xbf16>
    %c192 = arith.constant 192 : index
    %c0_8 = arith.constant 0 : index
    %41 = vector.load %arg2[%c192, %c0_8] : memref<320x1024xbf16, #tpu.memory_space<vmem>>, vector<64x1024xbf16>
    %cst_9 = arith.constant dense<0.000000e+00> : vector<32x1024xf32>
    %42 = tpu.matmul %40, %41, %cst_9 {dimension_numbers = #tpu.dot_dimension_numbers<[1], [0], [0], [1], [0, 0, 1, 1], [], []>} : vector<32x64xbf16>, vector<64x1024xbf16>, vector<32x1024xf32> -> vector<32x1024xf32>
    %43 = arith.addf %33, %42 : vector<32x1024xf32>
    %44 = vector.extract_strided_slice %1 {offsets = [0, 4, 0], sizes = [2, 16, 1], strides = [1, 1, 1]} : vector<2x24x1xi32> to vector<2x16x1xi32>
    %45 = vector.shape_cast %44 : vector<2x16x1xi32> to vector<32x1xi32>
    %46 = vector.broadcast %45 : vector<32x1xi32> to vector<32x64xi32>
    %47 = arith.cmpi eq, %46, %2 : vector<32x64xi32>
    %48 = arith.extui %47 : vector<32x64xi1> to vector<32x64xi32>
    %49 = arith.sitofp %48 : vector<32x64xi32> to vector<32x64xf32>
    %50 = arith.truncf %49 : vector<32x64xf32> to vector<32x64xbf16>
    %c256 = arith.constant 256 : index
    %c0_10 = arith.constant 0 : index
    %51 = vector.load %arg2[%c256, %c0_10] : memref<320x1024xbf16, #tpu.memory_space<vmem>>, vector<64x1024xbf16>
    %cst_11 = arith.constant dense<0.000000e+00> : vector<32x1024xf32>
    %52 = tpu.matmul %50, %51, %cst_11 {dimension_numbers = #tpu.dot_dimension_numbers<[1], [0], [0], [1], [0, 0, 1, 1], [], []>} : vector<32x64xbf16>, vector<64x1024xbf16>, vector<32x1024xf32> -> vector<32x1024xf32>
    %53 = arith.addf %43, %52 : vector<32x1024xf32>
    %c0_12 = arith.constant 0 : index
    %c0_13 = arith.constant 0 : index
    %54 = vector.load %arg3[%c0_12, %c0_13] : memref<1x1024xf32, #tpu.memory_space<vmem>>, vector<1x1024xf32>
    %55 = vector.broadcast %54 : vector<1x1024xf32> to vector<32x1024xf32>
    %56 = arith.addf %53, %55 : vector<32x1024xf32>
    %cst_14 = arith.constant 0.000000e+00 : f32
    %57 = vector.broadcast %cst_14 : f32 to vector<32x1024xf32>
    %58 = arith.maximumf %56, %57 : vector<32x1024xf32>
    %59 = vector.shape_cast %58 : vector<32x1024xf32> to vector<2x16x1024xf32>
    %c0_15 = arith.constant 0 : index
    %c0_16 = arith.constant 0 : index
    %60 = vector.load %arg4[%c0_15, %c0_16] : memref<16x1024xf32, #tpu.memory_space<vmem>>, vector<16x1024xf32>
    %61 = vector.shape_cast %60 : vector<16x1024xf32> to vector<1x16x1024xf32>
    %62 = vector.broadcast %61 : vector<1x16x1024xf32> to vector<2x16x1024xf32>
    %63 = arith.mulf %59, %62 : vector<2x16x1024xf32>
    %cst_17 = arith.constant dense<0xFF800000> : vector<2x1024xf32>
    %64 = vector.multi_reduction <maximumf>, %63, %cst_17 [1] : vector<2x16x1024xf32> to vector<2x1024xf32>
    %c0_18 = arith.constant 0 : index
    %c0_19 = arith.constant 0 : index
    %65 = vector.load %arg5[%c0_18, %c0_19] : memref<1024x128xf32, #tpu.memory_space<vmem>>, vector<1024x128xf32>
    %cst_20 = arith.constant dense<0.000000e+00> : vector<2x128xf32>
    %66 = tpu.matmul %64, %65, %cst_20 {dimension_numbers = #tpu.dot_dimension_numbers<[1], [0], [0], [1], [0, 0, 1, 1], [], []>} : vector<2x1024xf32>, vector<1024x128xf32>, vector<2x128xf32> -> vector<2x128xf32>
    %c0_21 = arith.constant 0 : index
    %c0_22 = arith.constant 0 : index
    %67 = vector.load %arg6[%c0_21, %c0_22] : memref<1x128xf32, #tpu.memory_space<vmem>>, vector<1x128xf32>
    %68 = vector.broadcast %67 : vector<1x128xf32> to vector<2x128xf32>
    %69 = arith.addf %66, %68 : vector<2x128xf32>
    %c0_23 = arith.constant 0 : index
    %c0_24 = arith.constant 0 : index
    %70 = vector.load %arg7[%c0_23, %c0_24] : memref<2x128xf32, #tpu.memory_space<vmem>>, vector<2x128xf32>
    tpu.vector_store %arg7[%c0_23, %c0_24], %69 {strides = array<i32>} : memref<2x128xf32, #tpu.memory_space<vmem>>, vector<2x128xf32>,
    return
  }
  func.func @transform_0(%arg0: i32) -> (i32, i32) {
    %c0_i32 = arith.constant 0 : i32
    %c0_i32_0 = arith.constant 0 : i32
    return %arg0, %c0_i32 : i32, i32
  }
  func.func @transform_1(%arg0: i32) -> (i32, i32) {
    %c0_i32 = arith.constant 0 : i32
    %c0_i32_0 = arith.constant 0 : i32
    %c0_i32_1 = arith.constant 0 : i32
    return %c0_i32, %c0_i32_0 : i32, i32
  }
  func.func @transform_2(%arg0: i32) -> (i32, i32) {
    %c0_i32 = arith.constant 0 : i32
    %c0_i32_0 = arith.constant 0 : i32
    %c0_i32_1 = arith.constant 0 : i32
    return %c0_i32, %c0_i32_0 : i32, i32
  }
  func.func @transform_3(%arg0: i32) -> (i32, i32) {
    %c0_i32 = arith.constant 0 : i32
    %c0_i32_0 = arith.constant 0 : i32
    %c0_i32_1 = arith.constant 0 : i32
    return %c0_i32, %c0_i32_0 : i32, i32
  }
  func.func @transform_4(%arg0: i32) -> (i32, i32) {
    %c0_i32 = arith.constant 0 : i32
    %c0_i32_0 = arith.constant 0 : i32
    %c0_i32_1 = arith.constant 0 : i32
    return %c0_i32, %c0_i32_0 : i32, i32
  }
  func.func @transform_5(%arg0: i32) -> (i32, i32) {
    %c0_i32 = arith.constant 0 : i32
    %c0_i32_0 = arith.constant 0 : i32
    %c0_i32_1 = arith.constant 0 : i32
    return %c0_i32, %c0_i32_0 : i32, i32
  }
  func.func @transform_6(%arg0: i32) -> (i32, i32) {
    %c0_i32 = arith.constant 0 : i32
    %c0_i32_0 = arith.constant 0 : i32
    return %arg0, %c0_i32 : i32, i32
  }
}

</mosaic_0001>

<bundles_post_ra>
// kernel: textcnn2_forward.1
= control target key start
LH: loop header
LB: loop body
LE: loop exit
PB: predicated region body
PF: predicated region fallthrough
CT: control target
= control target key end

     0   :  { %11 = vsyncpa [#allocation3], 0  ;;  %s4434_s0 = inlined_call_operand.vmem [shape: s32[48,1], index: 0, kind: input, shape index: {}]   ;;  %s4435_s1 = inlined_call_operand.hbm [shape: bf16[320,1024], index: 1, kind: input, shape index: {}]   ;;  %s4436_s2 = inlined_call_operand.vmem [shape: f32[1,1024], index: 2, kind: input, shape index: {}]   ;;  %s4437_s3 = inlined_call_operand.hbm [shape: f32[16,1024], index: 3, kind: input, shape index: {}]   ;;  %s4438_s4 = inlined_call_operand.hbm [shape: f32[1024,128], index: 4, kind: input, shape index: {}]   ;;  %s4439_s5 = inlined_call_operand.vmem [shape: f32[1,128], index: 5, kind: input, shape index: {}]   ;;  %s4440_s6 = inlined_call_operand.hbm [shape: f32[2,128], index: 6, kind: output, shape index: {}]  }
   0x1   :  { %12 = vsyncpa [#allocation6], 0 }
   0x2   :  { %13 = vsyncpa [#allocation4], 0  ;;  %s3587_s21 = smov [#allocation5]  }
   0x3   :  { %s35_s22 = sshll.u32 %s3587_s21, 4  ;;  %s36_s22 = int_to_ptr.vmem [resolvable:$true] %s35_s22 }
   0x4   :  { %s3509_s23 = scalar_lea.vmem %s36_s22, 2048  ;;  %p3514_p1 = scmp.lt.s32.totalorder %s36_s22, %s36_s22 }
   0x5   :  { %p3510_p0 = scmp.ne.s32.totalorder %s36_s22, %s3509_s23  ;;  %p3515_p2 = scmp.lt.s32.totalorder %s3509_s23, %s3509_s23 }
   0x7   :  { %p3516_p3 = por %p3515_p2, %p3514_p1 }
   0x9   :  { %p3517_p4 = pnand %p3516_p3, %p3510_p0 }
   0xb   :  { %3520 = shalt.err (!%p3517_p4)
}
   0xc   :  { %s3588_s24 = smov 1024   ;;  %s3589_s25 = smov 64  }
   0xd   :  { %41 = dma.hbm_to_vmem [thread:$0]  %s4437_s3, 2048, %s36_s22, [#allocation6], %s3588_s24, %s3588_s24, %s3589_s25  }
   0xe   :  { %s3590_s28 = smov [#allocation2]  }
   0xf   :  { %s21_s29 = sshll.u32 %s3590_s28, 4  ;;  %s22_s29 = int_to_ptr.vmem [resolvable:$true] %s21_s29 }
  0x10   :  { %s3529_s30 = scalar_lea.vmem %s22_s29, 20480  ;;  %p3534_p6 = scmp.lt.s32.totalorder %s22_s29, %s22_s29 }
  0x11   :  { %p3530_p5 = scmp.ne.s32.totalorder %s22_s29, %s3529_s30  ;;  %p3535_p7 = scmp.lt.s32.totalorder %s3529_s30, %s3529_s30 }
  0x13   :  { %p3536_p8 = por %p3535_p7, %p3534_p6 }
  0x15   :  { %p3537_p9 = pnand %p3536_p8, %p3530_p5 }
  0x17   :  { %3540 = shalt.err (!%p3537_p9)
}
  0x18   :  { %s3591_s7 = smov 512   ;;  %s3592_s8 = smov 32  }
  0x19   :  { %27 = dma.hbm_to_vmem [thread:$0]  %s4435_s1, 20480, %s22_s29, [#allocation3], %s3591_s7, %s3591_s7, %s3592_s8  }
  0x1a   :  { %s3593_s11 = smov [#allocation7]  }
  0x1b   :  { %s47_s12 = sshll.u32 %s3593_s11, 4  ;;  %s48_s12 = int_to_ptr.vmem [resolvable:$true] %s47_s12 }
  0x1c   :  { %s3549_s3 = scalar_lea.vmem %s48_s12, 16384  ;;  %p3554_p11 = scmp.lt.s32.totalorder %s48_s12, %s48_s12 }
  0x1d   :  { %p3550_p10 = scmp.ne.s32.totalorder %s48_s12, %s3549_s3  ;;  %p3555_p12 = scmp.lt.s32.totalorder %s3549_s3, %s3549_s3 }
  0x1f   :  { %p3556_p13 = por %p3555_p12, %p3554_p11 }
  0x21   :  { %p3557_p0 = pnand %p3556_p13, %p3550_p10 }
  0x23   :  { %3560 = shalt.err (!%p3557_p0)
}
  0x24   :  { %s3594_s13 = smov 128   ;;  %s3595_s14 = smov 8  }
  0x25   :  { %53 = dma.hbm_to_vmem [thread:$0]  %s4438_s4, 16384, %s48_s12, [#allocation6], %s3594_s13, %s3594_s13, %s3595_s14  }
  0x26   :  { %3581 = dma.done.wait [#allocation3], 20480  }
  0x27   :  { %3582 = vsyncadd [#allocation3], 4294946816 }
  0x28   :  { %3583 = dma.done.wait [#allocation6], 18432  }
  0x29   :  { %3584 = vsyncadd [#allocation6], 4294948864  ;;  %v3596_v0 = vmov 0   ;;  %v3650_v1 = vld [vmem:[%s4434_s0 + $0x18] sm:$0xff]  ;;  %v3655_v2 = vld [vmem:[%s4434_s0 + $0x20] sm:$0xff]  ;;  %vm132_vm0 = vcmask 1046528  }
  0x2a   :  { %3500 = vset.pattern.permute.xlu1 %v3596_v0  ;;  %3499 = vset.pattern.permute.xlu0 %v3596_v0  ;;  %v3660_v3 = vld [vmem:[%s4434_s0] sm:$0xff]  ;;  %v138_v4 = vrot.slane %v3650_v1, 1  ;;  %v139_v5 = vrot.slane %v3655_v2, 1  ;;  %v3667_v6 = vld [vmem:[%s4434_s0 + $0x8] sm:$0xff]  ;;  %v3678_v9 = vld [vmem:[%s4434_s0 + $0x10] sm:$0xff]  ;;  %vm958_vm1 = vcmask 1045504  }
  0x2b   :  { %400 = vmatprep.mubr.bf16.mxu0 %v3596_v0  ;;  %453 = vmatprep.mubr.bf16.mxu1 %v3596_v0  ;;  %v133_v7 = vrot.slane %v3660_v3, 1  ;;  %v3673_v8 = vld [vmem:[%s4434_s0 + $0x28] sm:$0xff]  ;;  %v134_v10 = vrot.slane %v3667_v6, 1  ;;  %v136_v12 = vrot.slane %v3678_v9, 1  ;;  %v193_v17 = vld [vmem:[#allocation2 + $0x1c0] sm:$0xff]  ;;  %v3688_v34 = vld [vmem:[#allocation2 + $0x1d0] sm:$0xff] }
  0x2c   :  { %v141_v11 = vrot.slane %v3673_v8, 1  ;;  %v140_v13 = vsel %vm132_vm0, %v138_v4, %v139_v5  ;;  %v197_v18 = vld [vmem:[#allocation2 + $0x1e0] sm:$0xff]  ;;  %v194_v19 = vld [vmem:[#allocation2 + $0x1c8] sm:$0xff]  ;;  %v960_v35 = vrot.slane %v3667_v6, 2  ;;  %v962_v36 = vrot.slane %v3678_v9, 2  ;;  %v3693_v39 = vld [vmem:[#allocation2 + $0x1f0] sm:$0xff] }
  0x2d   :  { %150 = vperm.xlu1 %3500, %v140_v13   ;;  %v135_v14 = vsel %vm132_vm0, %v133_v7, %v134_v10  ;;  %v137_v16 = vsel %vm132_vm0, %v134_v10, %v136_v12  ;;  %v198_v20 = vld [vmem:[#allocation2 + $0x1e8] sm:$0xff]  ;;  %v185_v21 = vld [vmem:[#allocation2 + $0x180] sm:$0xff]  ;;  %v3159_v23 = vcombine.high %v193_v17, %v197_v18  ;;  %v3158_v26 = vcombine.low %v193_v17, %v197_v18  ;;  %v3695_v40 = vld [vmem:[#allocation2 + $0x1d8] sm:$0xff]  ;;  %s3598_s29 = smov [#allocation8]  }
  0x2e   :  { %144 = vperm.xlu0 %3499, %v135_v14   ;;  %v142_v15 = vsel %vm132_vm0, %v139_v5, %v141_v11  ;;  %v189_v22 = vld [vmem:[#allocation2 + $0x1a0] sm:$0xff]  ;;  %v186_v24 = vld [vmem:[#allocation2 + $0x188] sm:$0xff]  ;;  %v3161_v27 = vcombine.high %v194_v19, %v198_v20  ;;  %v3160_v28 = vcombine.low %v194_v19, %v198_v20  ;;  %v3697_v41 = vld [vmem:[#allocation2 + $0x1f8] sm:$0xff]  ;;  %v959_v42 = vrot.slane %v3660_v3, 2  ;;  %s3116_s30 = sshll.u32 %s3598_s29, 4  ;;  %s3117_s30 = int_to_ptr.vmem [resolvable:$true] %s3116_s30 }
  0x2f   :  { %v190_v25 = vld [vmem:[#allocation2 + $0x1a8] sm:$0xff]  ;;  %v177_v29 = vld [vmem:[#allocation2 + $0x140] sm:$0xff]  ;;  %376 = vmatprep.subr.bf16.mxu0 %v3159_v23  ;;  %v3151_v31 = vcombine.high %v185_v21, %v189_v22  ;;  %v3150_v37 = vcombine.low %v185_v21, %v189_v22  ;;  %v3162_v48 = vcombine.low %v3688_v34, %v3693_v39  ;;  %v3164_v49 = vcombine.low %v3695_v40, %v3697_v41  ;;  %s3561_s7 = scalar_lea.vmem %s3117_s30, 32  ;;  %p3566_p2 = scmp.lt.s32.totalorder %s3117_s30, %s3117_s30 }
  0x30   :  { %v181_v30 = vld [vmem:[#allocation2 + $0x160] sm:$0xff]  ;;  %v178_v32 = vld [vmem:[#allocation2 + $0x148] sm:$0xff]  ;;  %377 = vmatpush1.bf16.msra.mxu0 %v3158_v26  ;;  %v3153_v38 = vcombine.high %v186_v24, %v190_v25  ;;  %429 = vmatprep.subr.bf16.mxu1 %v3161_v27  ;;  %v3152_v44 = vcombine.low %v186_v24, %v190_v25  ;;  %v963_v50 = vsel %vm958_vm1, %v960_v35, %v962_v36  ;;  %v965_v51 = vrot.slane %v3655_v2, 2  ;;  %p3562_p1 = scmp.ne.s32.totalorder %s3117_s30, %s3561_s7  ;;  %p3567_p3 = scmp.lt.s32.totalorder %s3561_s7, %s3561_s7 }
  0x31   :  { %153 = vperm.xlu1 %3500, %v142_v15   ;;  %v182_v33 = vld [vmem:[#allocation2 + $0x168] sm:$0xff]  ;;  %378 = vmatprep.subr.bf16.mxu0 %v3151_v31  ;;  %v3143_v43 = vcombine.high %v177_v29, %v181_v30  ;;  %v169_v45 = vld [vmem:[#allocation2 + $0x100] sm:$0xff]  ;;  %v967_v52 = vrot.slane %v3673_v8, 2  ;;  %v3142_v53 = vcombine.low %v177_v29, %v181_v30  ;;  %v961_v56 = vsel %vm958_vm1, %v959_v42, %v960_v35  ;;  %v187_v31 = vld [vmem:[#allocation2 + $0x190] sm:$0xff] }
  0x32   :  { %147 = vperm.xlu0 %3499, %v137_v16   ;;  %430 = vmatpush1.bf16.msra.mxu1 %v3160_v28  ;;  %v173_v46 = vld [vmem:[#allocation2 + $0x120] sm:$0xff]  ;;  %v3145_v47 = vcombine.high %v178_v32, %v182_v33  ;;  %v170_v54 = vld [vmem:[#allocation2 + $0x108] sm:$0xff]  ;;  %v964_v57 = vrot.slane %v3650_v1, 2  ;;  %v3144_v59 = vcombine.low %v178_v32, %v182_v33  ;;  %v1439_v62 = vrot.slane %v3667_v6, 3  ;;  %v191_v32 = vld [vmem:[#allocation2 + $0x1b0] sm:$0xff]  ;;  %p3568_p4 = por %p3567_p3, %p3566_p2 }
  0x33   :  { %431 = vmatprep.subr.bf16.mxu1 %v3153_v38  ;;  %v174_v55 = vld [vmem:[#allocation2 + $0x128] sm:$0xff]  ;;  %v3135_v58 = vcombine.high %v169_v45, %v173_v46  ;;  %v968_v61 = vsel %vm958_vm1, %v965_v51, %v967_v52  ;;  %v1441_v63 = vrot.slane %v3678_v9, 3  ;;  %v3134_v4 = vcombine.low %v169_v45, %v173_v46  ;;  %v188_v33 = vld [vmem:[#allocation2 + $0x198] sm:$0xff]  ;;  %v179_v45 = vld [vmem:[#allocation2 + $0x150] sm:$0xff] }
  0x34   :  { %379 = vmatpush1.bf16.msra.mxu0 %v3150_v37  ;;  %v3137_v60 = vcombine.high %v170_v54, %v174_v55  ;;  %v966_v5 = vsel %vm958_vm1, %v964_v57, %v965_v51  ;;  %vm1437_vm2 = vcmask 1044480   ;;  %v1438_v7 = vrot.slane %v3660_v3, 3  ;;  %v184_v51 = vld [vmem:[#allocation2 + $0x178] sm:$0xff]  ;;  %v171_v57 = vld [vmem:[#allocation2 + $0x110] sm:$0xff]  ;;  %p3569_p5 = pnand %p3568_p4, %p3562_p1 }
  0x35   :  { %78 = vperm.xlu1 %3500, %v3667_v6   ;;  %380 = vmatprep.subr.bf16.mxu0 %v3143_v43  ;;  %v3163_v10 = vcombine.high %v3688_v34, %v3693_v39  ;;  %v3136_v11 = vcombine.low %v170_v54, %v174_v55  ;;  %v3165_v12 = vcombine.high %v3695_v40, %v3697_v41  ;;  %v1444_v14 = vrot.slane %v3655_v2, 3  ;;  %v175_v34 = vld [vmem:[#allocation2 + $0x130] sm:$0xff]  ;;  %v172_v39 = vld [vmem:[#allocation2 + $0x118] sm:$0xff] }
  0x36   :  { %75 = vperm.xlu0 %3499, %v3660_v3   ;;  %432 = vmatpush1.bf16.msra.mxu1 %v3152_v44  ;;  %v1442_v13 = vsel %vm1437_vm2, %v1439_v62, %v1441_v63  ;;  %v1446_v15 = vrot.slane %v3673_v8, 3  ;;  %v1440_v16 = vsel %vm1437_vm2, %v1438_v7, %v1439_v62  ;;  %v1443_v17 = vrot.slane %v3650_v1, 3  ;;  %v176_v40 = vld [vmem:[#allocation2 + $0x138] sm:$0xff]  ;;  %v128_v7 = vld [vmem:[#allocation2 + $0xe0] sm:$0xff] }
  0x37   :  { %433 = vmatprep.subr.bf16.mxu1 %v3145_v47  ;;  %v1918_v19 = vrot.slane %v3667_v6, 4  ;;  %v1920_v20 = vrot.slane %v3678_v9, 4  ;;  %vm1916_vm3 = vcmask 1043456   ;;  %v1917_v22 = vrot.slane %v3660_v3, 4  ;;  %v183_v47 = vld [vmem:[#allocation2 + $0x170] sm:$0xff] }
  0x38   :  { %381 = vmatpush1.bf16.msra.mxu0 %v3142_v53  ;;  %v1447_v18 = vsel %vm1437_vm2, %v1444_v14, %v1446_v15  ;;  %v1445_v21 = vsel %vm1437_vm2, %v1443_v17, %v1444_v14  ;;  %v1923_v24 = vrot.slane %v3655_v2, 4  ;;  %v1925_v25 = vrot.slane %v3673_v8, 4 }
  0x39   :  { %84 = vperm.xlu1 %3500, %v3655_v2   ;;  %382 = vmatprep.subr.bf16.mxu0 %v3135_v58  ;;  %v1921_v23 = vsel %vm1916_vm3, %v1918_v19, %v1920_v20  ;;  %v1919_v26 = vsel %vm1916_vm3, %v1917_v22, %v1918_v19  ;;  %v1922_v27 = vrot.slane %v3650_v1, 4  ;;  %v72_v9 = vlaneseq  ;;  %v116_v20 = vld [vmem:[#allocation2 + $0x80] sm:$0xff] }
  0x3a   :  { %81 = vperm.xlu0 %3499, %v3650_v1   ;;  %434 = vmatpush1.bf16.msra.mxu1 %v3144_v59  ;;  %v1926_v6 = vsel %vm1916_vm3, %v1923_v24, %v1925_v25  ;;  %v192_v1 = vld [vmem:[#allocation2 + $0x1b8] sm:$0xff]  ;;  %v3597_v35 = vmov 0.0   ;;  %vm361_vm6 = vcmask 523264   ;;  %v3155_v43 = vcombine.high %v187_v31, %v191_v32  ;;  %v120_v22 = vld [vmem:[#allocation2 + $0xa0] sm:$0xff] }
  0x3b   :  { %435 = vmatprep.subr.bf16.mxu1 %v3137_v60  ;;  %v1924_v28 = vsel %vm1916_vm3, %v1922_v27, %v1923_v24  ;;  %v3734_v29 = vand.u32 127, %v72_v9  ;;  %v3157_v44 = vcombine.high %v188_v33, %v192_v1  ;;  %v3154_v52 = vcombine.low %v187_v31, %v191_v32  ;;  %v121_v24 = vld [vmem:[#allocation2 + $0xa8] sm:$0xff]  ;;  %v108_v31 = vld [vmem:[#allocation2 + $0x40] sm:$0xff] }
  0x3c   :  { %383 = vmatpush1.bf16.msra.mxu0 %v3134_v4  ;;  %v3156_v53 = vcombine.low %v188_v33, %v192_v1  ;;  %v3147_v55 = vcombine.high %v179_v45, %v183_v47  ;;  %v3146_v41 = vcombine.low %v179_v45, %v183_v47  ;;  %v3139_v62 = vcombine.high %v171_v57, %v175_v34  ;;  %v124_v4 = vld [vmem:[#allocation2 + $0xc0] sm:$0xff]  ;;  %v109_v33 = vld [vmem:[#allocation2 + $0x48] sm:$0xff] }
  0x3d   :  { %973 = vperm.xlu1 %3500, %v963_v50   ;;  %482 = vmatprep.subr.bf16.mxu0 %v3163_v10  ;;  %v180_v50 = vld [vmem:[#allocation2 + $0x158] sm:$0xff]  ;;  %v3141_v63 = vcombine.high %v172_v39, %v176_v40  ;;  %v125_v10 = vld [vmem:[#allocation2 + $0xc8] sm:$0xff]  ;;  %v3138_v14 = vcombine.low %v171_v57, %v175_v34  ;;  %v3140_v15 = vcombine.low %v172_v39, %v176_v40  ;;  %v112_v32 = vld [vmem:[#allocation2 + $0x60] sm:$0xff] }
  0x3e   :  { %970 = vperm.xlu0 %3499, %v961_v56   ;;  %436 = vmatpush1.bf16.msra.mxu1 %v3136_v11  ;;  %v3149_v56 = vcombine.high %v180_v50, %v184_v51  ;;  %v129_v11 = vld [vmem:[#allocation2 + $0xe8] sm:$0xff]  ;;  %v3198_v27 = vcombine.low %v124_v4, %v128_v7 }
  0x3f   :  { %535 = vmatprep.subr.bf16.mxu1 %v3165_v12  ;;  %v3201_v19 = vcombine.high %v125_v10, %v129_v11  ;;  %v113_v1 = vld [vmem:[#allocation2 + $0x68] sm:$0xff] }
  0x40   :  { %v3184_v34 = vcombine.low %v109_v33, %v113_v1 }
  0x41   :  { %979 = vperm.xlu1 %3500, %v968_v61  }
  0x42   :  { %976 = vperm.xlu0 %3499, %v966_v5  }
  0x45   :  { %1452 = vperm.xlu1 %3500, %v1442_v13  }
  0x46   :  { %1449 = vperm.xlu0 %3499, %v1440_v16  }
  0x49   :  { %1458 = vperm.xlu1 %3500, %v1447_v18   ;;  %v3199_v18 = vcombine.high %v124_v4, %v128_v7  ;;  %v127_v4 = vld [vmem:[#allocation2 + $0xd8] sm:$0xff] }
  0x4a   :  { %1455 = vperm.xlu0 %3499, %v1445_v21  }
  0x4d   :  { %1931 = vperm.xlu1 %3500, %v1921_v23   ;;  %v117_v23 = vld [vmem:[#allocation2 + $0x88] sm:$0xff] }
  0x4e   :  { %1928 = vperm.xlu0 %3499, %v1919_v26  }
  0x51   :  { %1937 = vperm.xlu1 %3500, %v1926_v6   ;;  %v3200_v6 = vcombine.low %v125_v10, %v129_v11 }
  0x52   :  { %1934 = vperm.xlu0 %3499, %v1924_v28  }
  0xa8   :  { %v151_v3 = vpop.permute.xlu1 %150 }
  0xa9   :  { %v145_v30 = vpop.permute.xlu0 %144  ;;  %vm157_vm7 = vcmp.eq.s32.totalorder %v151_v3, %v3734_v29 }
  0xaa   :  { %vm155_vm4 = vcmp.eq.s32.totalorder %v145_v30, %v3734_v29  ;;  %v3132_v58 = vsel %vm157_vm7, 1.0, %v3597_v35  ;;  %v3191_v30 = vcombine.high %v116_v20, %v120_v22 }
  0xab   :  { %v3130_v36 = vsel %vm155_vm4, 1.0, %v3597_v35 }
  0xac   :  { %v154_v2 = vpop.permute.xlu1 %153 }
  0xad   :  { %v148_v8 = vpop.permute.xlu0 %147  ;;  %vm158_vm8 = vcmp.eq.s32.totalorder %v154_v2, %v3734_v29  ;;  %v3193_v2 = vcombine.high %v117_v23, %v121_v24 }
  0xae   :  { %vm156_vm5 = vcmp.eq.s32.totalorder %v148_v8, %v3734_v29  ;;  %v3133_v59 = vsel %vm158_vm8, 1.0, %v3597_v35 }
  0xaf   :  { %v3131_v37 = vsel %vm156_vm5, 1.0, %v3597_v35 }
  0xb0   :  { %v3740_v38 = vpack.c.bf16 %v3131_v37, %v3130_v36  ;;  %v3742_v42 = vpop.permute.xlu1 %78 }
  0xb1   :  { %v3744_v46 = vpop.permute.xlu0 %75  ;;  %vm87_vm2 = vcmp.eq.s32.totalorder %v3742_v42, %v3734_v29 }
  0xb2   :  { %3166 = vmatmul.mubr.msk.bf16.vlgmr.msra.gmra.mxu0 %vm361_vm6, %v3740_v38  ;;  %3168 = vmatmul.mubr.msk.bf16.vlgmr.msra.gmra.mxu1 %vm361_vm6, %v3740_v38  ;;  %vm86_vm3 = vcmp.eq.s32.totalorder %v3744_v46, %v3734_v29 }
  0xb3   :  { %483 = vmatpush1.bf16.msra.mxu0 %v3162_v48  ;;  %536 = vmatpush1.bf16.msra.mxu1 %v3164_v49  ;;  %v3148_v48 = vcombine.low %v180_v50, %v184_v51  ;;  %v3766_v49 = vpack.c.bf16 %v3133_v59, %v3132_v58  ;;  %v3183_v50 = vcombine.high %v108_v31, %v112_v32 }
  0xb4   :  { %v3758_v54 = vpop.permute.xlu1 %84  ;;  %484 = vmatprep.subr.bf16.mxu0 %v3155_v43  ;;  %537 = vmatprep.subr.bf16.mxu1 %v3157_v44  ;;  %v3190_v43 = vcombine.low %v116_v20, %v120_v22  ;;  %v3192_v44 = vcombine.low %v117_v23, %v121_v24  ;;  %v3185_v51 = vcombine.high %v109_v33, %v113_v1  ;;  %v3126_v20 = vsel %vm86_vm3, 1.0, %v3597_v35  ;;  %v119_v22 = vld [vmem:[#allocation2 + $0x98] sm:$0xff] }
  0xb5   :  { %v3762_v60 = vpop.permute.xlu0 %81  ;;  %410 = vmatprep.mubr.bf16.mxu0 %v3596_v0  ;;  %463 = vmatprep.mubr.bf16.mxu1 %v3596_v0  ;;  %v3182_v59 = vcombine.low %v108_v31, %v112_v32  ;;  %v123_v23 = vld [vmem:[#allocation2 + $0xb8] sm:$0xff]  ;;  %vm89_vm8 = vcmp.eq.s32.totalorder %v3758_v54, %v3734_v29 }
  0xb6   :  { %v111_v31 = vld [vmem:[#allocation2 + $0x58] sm:$0xff]  ;;  %v3196_v33 = vcombine.low %v119_v22, %v123_v23  ;;  %v3129_v54 = vsel %vm89_vm8, 1.0, %v3597_v35 }
  0xb7   :  { %485 = vmatpush1.bf16.msra.mxu0 %v3154_v52  ;;  %538 = vmatpush1.bf16.msra.mxu1 %v3156_v53  ;;  %v100_v52 = vld [vmem:[#allocation2] sm:$0xff] }
  0xb8   :  { %v974_v61 = vpop.permute.xlu1 %973  ;;  %486 = vmatprep.subr.bf16.mxu0 %v3147_v55  ;;  %539 = vmatprep.subr.bf16.mxu1 %v3149_v56  ;;  %v101_v55 = vld [vmem:[#allocation2 + $0x8] sm:$0xff] }
  0xb9   :  { %vm982_vm9 = vcmp.eq.s32.totalorder %v974_v61, %v3734_v29  ;;  %v971_v5 = vpop.permute.xlu0 %970  ;;  %v105_v56 = vld [vmem:[#allocation2 + $0x28] sm:$0xff]  ;;  %v126_v61 = vld [vmem:[#allocation2 + $0xd0] sm:$0xff] }
  0xba   :  { %v3215_v12 = vsel %vm982_vm9, 1.0, %v3597_v35  ;;  %vm981_vm10 = vcmp.eq.s32.totalorder %v971_v5, %v3734_v29  ;;  %3167 = vmatmul.mubr.msk.bf16.gmra.mxu0 %vm361_vm6, %v3766_v49  ;;  %3169 = vmatmul.mubr.msk.bf16.gmra.mxu1 %vm361_vm6, %v3766_v49  ;;  %v131_v5 = vld [vmem:[#allocation2 + $0xf8] sm:$0xff]  ;;  %vm88_vm9 = vcmp.eq.s32.totalorder %v3762_v60, %v3734_v29 }
  0xbb   :  { %v3214_v13 = vsel %vm981_vm10, 1.0, %v3597_v35  ;;  %487 = vmatpush1.bf16.msra.mxu0 %v3146_v41  ;;  %540 = vmatpush1.bf16.msra.mxu1 %v3148_v48  ;;  %v3177_v48 = vcombine.high %v101_v55, %v105_v56  ;;  %v3204_v46 = vcombine.low %v127_v4, %v131_v5  ;;  %v103_v60 = vld [vmem:[#allocation2 + $0x18] sm:$0xff] }
  0xbc   :  { %v3776_v16 = vpack.c.bf16 %v3215_v12, %v3214_v13  ;;  %v980_v17 = vpop.permute.xlu1 %979  ;;  %488 = vmatprep.subr.bf16.mxu0 %v3139_v62  ;;  %541 = vmatprep.subr.bf16.mxu1 %v3141_v63  ;;  %v130_v63 = vld [vmem:[#allocation2 + $0xf0] sm:$0xff]  ;;  %v3176_v12 = vcombine.low %v101_v55, %v105_v56  ;;  %v1023_v55 = vld [vmem:[#allocation2 + $0x2e0] sm:$0xff]  ;;  %v1024_v56 = vld [vmem:[#allocation2 + $0x2e8] sm:$0xff] }
  0xbd   :  { %vm984_vm11 = vcmp.eq.s32.totalorder %v980_v17, %v3734_v29  ;;  %v977_v21 = vpop.permute.xlu0 %976  ;;  %506 = vmatprep.mubr.bf16.mxu0 %v3596_v0  ;;  %559 = vmatprep.mubr.bf16.mxu1 %v3596_v0  ;;  %v3205_v17 = vcombine.high %v127_v4, %v131_v5 }
  0xbe   :  { %v3217_v25 = vsel %vm984_vm11, 1.0, %v3597_v35  ;;  %vm983_vm12 = vcmp.eq.s32.totalorder %v977_v21, %v3734_v29 }
  0xbf   :  { %v3216_v26 = vsel %vm983_vm12, 1.0, %v3597_v35  ;;  %489 = vmatpush1.bf16.msra.mxu0 %v3138_v14  ;;  %542 = vmatpush1.bf16.msra.mxu1 %v3140_v15  ;;  %v3203_v15 = vcombine.high %v126_v61, %v130_v63 }
  0xc0   :  { %v3784_v28 = vpack.c.bf16 %v3217_v25, %v3216_v26  ;;  %v1453_v3 = vpop.permute.xlu1 %1452  ;;  %754 = vmatprep.subr.bf16.mxu0 %v3199_v18  ;;  %807 = vmatprep.subr.bf16.mxu1 %v3201_v19  ;;  %v118_v18 = vld [vmem:[#allocation2 + $0x90] sm:$0xff]  ;;  %v3202_v25 = vcombine.low %v126_v61, %v130_v63  ;;  %v1016_v61 = vld [vmem:[#allocation2 + $0x2a8] sm:$0xff] }
  0xc1   :  { %vm1461_vm13 = vcmp.eq.s32.totalorder %v1453_v3, %v3734_v29  ;;  %v1450_v8 = vpop.permute.xlu0 %1449  ;;  %v122_v19 = vld [vmem:[#allocation2 + $0xb0] sm:$0xff]  ;;  %v3197_v3 = vcombine.high %v119_v22, %v123_v23 }
  0xc2   :  { %v3259_v36 = vsel %vm1461_vm13, 1.0, %v3597_v35  ;;  %vm1460_vm14 = vcmp.eq.s32.totalorder %v1450_v8, %v3734_v29  ;;  %3170 = vmatmul.mubr.msk.bf16.vlgmr.msra.gmra.mxu0 %vm361_vm6, %v3740_v38  ;;  %3172 = vmatmul.mubr.msk.bf16.vlgmr.msra.gmra.mxu1 %vm361_vm6, %v3740_v38  ;;  %v104_v38 = vld [vmem:[#allocation2 + $0x20] sm:$0xff]  ;;  %v3195_v26 = vcombine.high %v118_v18, %v122_v19  ;;  %v115_v8 = vld [vmem:[#allocation2 + $0x78] sm:$0xff]  ;;  %v3194_v32 = vcombine.low %v118_v18, %v122_v19 }
  0xc3   :  { %v3258_v37 = vsel %vm1460_vm14, 1.0, %v3597_v35  ;;  %755 = vmatpush1.bf16.msra.mxu0 %v3198_v27  ;;  %808 = vmatpush1.bf16.msra.mxu1 %v3200_v6  ;;  %v3175_v41 = vcombine.high %v100_v52, %v104_v38  ;;  %v3174_v11 = vcombine.low %v100_v52, %v104_v38  ;;  %v1019_v38 = vld [vmem:[#allocation2 + $0x2c0] sm:$0xff] }
  0xc4   :  { %v3794_v45 = vpack.c.bf16 %v3259_v36, %v3258_v37  ;;  %v1459_v47 = vpop.permute.xlu1 %1458  ;;  %756 = vmatprep.subr.bf16.mxu0 %v3191_v30  ;;  %809 = vmatprep.subr.bf16.mxu1 %v3193_v2  ;;  %v110_v30 = vld [vmem:[#allocation2 + $0x50] sm:$0xff]  ;;  %v3189_v36 = vcombine.high %v111_v31, %v115_v8  ;;  %v995_v19 = vld [vmem:[#allocation2 + $0x200] sm:$0xff] }
  0xc5   :  { %vm1463_vm15 = vcmp.eq.s32.totalorder %v1459_v47, %v3734_v29  ;;  %v1456_v53 = vpop.permute.xlu0 %1455  ;;  %516 = vmatprep.mubr.bf16.mxu0 %v3596_v0  ;;  %569 = vmatprep.mubr.bf16.mxu1 %v3596_v0  ;;  %v114_v2 = vld [vmem:[#allocation2 + $0x70] sm:$0xff] }
  0xc6   :  { %v3261_v57 = vsel %vm1463_vm15, 1.0, %v3597_v35  ;;  %vm1462_vm0 = vcmp.eq.s32.totalorder %v1456_v53, %v3734_v29  ;;  %v3187_v1 = vcombine.high %v110_v30, %v114_v2  ;;  %v102_v37 = vld [vmem:[#allocation2 + $0x10] sm:$0xff]  ;;  %v3186_v47 = vcombine.low %v110_v30, %v114_v2 }
  0xc7   :  { %v3260_v58 = vsel %vm1462_vm0, 1.0, %v3597_v35  ;;  %757 = vmatpush1.bf16.msra.mxu0 %v3190_v43  ;;  %810 = vmatpush1.bf16.msra.mxu1 %v3192_v44  ;;  %v3128_v43 = vsel %vm88_vm9, 1.0, %v3597_v35  ;;  %v107_v44 = vld [vmem:[#allocation2 + $0x38] sm:$0xff] }
  0xc8   :  { %v3802_v39 = vpack.c.bf16 %v3261_v57, %v3260_v58  ;;  %v1932_v40 = vpop.permute.xlu1 %1931  ;;  %758 = vmatprep.subr.bf16.mxu0 %v3183_v50  ;;  %811 = vmatprep.subr.bf16.mxu1 %v3185_v51  ;;  %v3188_v50 = vcombine.low %v111_v31, %v115_v8  ;;  %v3848_v51 = vpack.c.bf16 %v3129_v54, %v3128_v43  ;;  %v1013_v8 = vld [vmem:[#allocation2 + $0x290] sm:$0xff] }
  0xc9   :  { %vm1940_vm1 = vcmp.eq.s32.totalorder %v1932_v40, %v3734_v29  ;;  %v1929_v62 = vpop.permute.xlu0 %1928  ;;  %v3181_v53 = vcombine.high %v103_v60, %v107_v44  ;;  %v3180_v58 = vcombine.low %v103_v60, %v107_v44  ;;  %v1011_v40 = vld [vmem:[#allocation2 + $0x280] sm:$0xff]  ;;  %v1009_v60 = vld [vmem:[#allocation2 + $0x270] sm:$0xff]  ;;  %v1006_v44 = vld [vmem:[#allocation2 + $0x258] sm:$0xff] }
  0xca   :  { %v3303_v7 = vsel %vm1940_vm1, 1.0, %v3597_v35  ;;  %vm1939_vm4 = vcmp.eq.s32.totalorder %v1929_v62, %v3734_v29  ;;  %3171 = vmatmul.mubr.msk.bf16.gmra.mxu0 %vm361_vm6, %v3766_v49  ;;  %3173 = vmatmul.mubr.msk.bf16.gmra.mxu1 %vm361_vm6, %v3766_v49  ;;  %v3127_v49 = vsel %vm87_vm2, 1.0, %v3597_v35  ;;  %v3242_v62 = vcombine.low %v1019_v38, %v1023_v55 }
  0xcb   :  { %v3302_v10 = vsel %vm1939_vm4, 1.0, %v3597_v35  ;;  %759 = vmatpush1.bf16.msra.mxu0 %v3182_v59  ;;  %812 = vmatpush1.bf16.msra.mxu1 %v3184_v34  ;;  %v3832_v27 = vpack.c.bf16 %v3127_v49, %v3126_v20  ;;  %v3243_v59 = vcombine.high %v1019_v38, %v1023_v55  ;;  %v999_v49 = vld [vmem:[#allocation2 + $0x220] sm:$0xff]  ;;  %v996_v20 = vld [vmem:[#allocation2 + $0x208] sm:$0xff]  ;;  %v997_v38 = vld [vmem:[#allocation2 + $0x210] sm:$0xff] }
  0xcc   :  { %v3816_v13 = vpack.c.bf16 %v3303_v7, %v3302_v10  ;;  %v1938_v14 = vpop.permute.xlu1 %1937  ;;  %760 = vmatprep.subr.bf16.mxu0 %v3175_v41  ;;  %813 = vmatprep.subr.bf16.mxu1 %v3177_v48  ;;  %v1015_v41 = vld [vmem:[#allocation2 + $0x2a0] sm:$0xff]  ;;  %v1012_v48 = vld [vmem:[#allocation2 + $0x288] sm:$0xff]  ;;  %v1001_v55 = vld [vmem:[#allocation2 + $0x230] sm:$0xff] }
  0xcd   :  { %vm1942_vm5 = vcmp.eq.s32.totalorder %v1938_v14, %v3734_v29  ;;  %v1935_v21 = vpop.permute.xlu0 %1934  ;;  %778 = vmatprep.mubr.bf16.mxu0 %v3596_v0  ;;  %831 = vmatprep.mubr.bf16.mxu1 %v3596_v0  ;;  %v3235_v4 = vcombine.high %v1011_v40, %v1015_v41  ;;  %v3237_v5 = vcombine.high %v1012_v48, %v1016_v61  ;;  %v1003_v7 = vld [vmem:[#allocation2 + $0x240] sm:$0xff] }
  0xce   :  { %v3305_v24 = vsel %vm1942_vm5, 1.0, %v3597_v35  ;;  %vm1941_vm7 = vcmp.eq.s32.totalorder %v1935_v21, %v3734_v29  ;;  %v106_v29 = vld [vmem:[#allocation2 + $0x30] sm:$0xff]  ;;  %v1007_v10 = vld [vmem:[#allocation2 + $0x260] sm:$0xff]  ;;  %v3234_v14 = vcombine.low %v1011_v40, %v1015_v41  ;;  %v1000_v21 = vld [vmem:[#allocation2 + $0x228] sm:$0xff] }
  0xcf   :  { %v3304_v42 = vsel %vm1941_vm7, 1.0, %v3597_v35  ;;  %761 = vmatpush1.bf16.msra.mxu0 %v3174_v11  ;;  %814 = vmatpush1.bf16.msra.mxu1 %v3176_v12  ;;  %v3179_v52 = vcombine.high %v102_v37, %v106_v29  ;;  %v1020_v35 = vld [vmem:[#allocation2 + $0x2c8] sm:$0xff]  ;;  %v3178_v57 = vcombine.low %v102_v37, %v106_v29  ;;  %v3226_v22 = vcombine.low %v1003_v7, %v1007_v10  ;;  %v1005_v29 = vld [vmem:[#allocation2 + $0x250] sm:$0xff]  ;;  %v1498_v40 = vld [vmem:[#allocation2 + $0x3c0] sm:$0xff] }
  0xd0   :  { %v3834_v6 = vpack.c.bf16 %v3305_v24, %v3304_v42  ;;  %860 = vmatprep.subr.bf16.mxu0 %v3203_v15  ;;  %913 = vmatprep.subr.bf16.mxu1 %v3205_v17  ;;  %v3245_v34 = vcombine.high %v1020_v35, %v1024_v56  ;;  %v3244_v63 = vcombine.low %v1020_v35, %v1024_v56  ;;  %v1004_v11 = vld [vmem:[#allocation2 + $0x248] sm:$0xff]  ;;  %v998_v35 = vld [vmem:[#allocation2 + $0x218] sm:$0xff]  ;;  %v1502_v41 = vld [vmem:[#allocation2 + $0x3e0] sm:$0xff] }
  0xd1   :  { %v1008_v12 = vld [vmem:[#allocation2 + $0x268] sm:$0xff]  ;;  %v3236_v15 = vcombine.low %v1012_v48, %v1016_v61  ;;  %v3227_v17 = vcombine.high %v1003_v7, %v1007_v10  ;;  %v3219_v24 = vcombine.high %v995_v19, %v999_v49  ;;  %v3221_v42 = vcombine.high %v996_v20, %v1000_v21  ;;  %v1002_v56 = vld [vmem:[#allocation2 + $0x238] sm:$0xff]  ;;  %v1490_v7 = vld [vmem:[#allocation2 + $0x380] sm:$0xff] }
  0xd2   :  { %3206 = vmatmul.mubr.msk.bf16.vlgmr.msra.gmra.mxu0 %vm361_vm6, %v3832_v27  ;;  %3208 = vmatmul.mubr.msk.bf16.vlgmr.msra.gmra.mxu1 %vm361_vm6, %v3832_v27  ;;  %v3229_v18 = vcombine.high %v1004_v11, %v1008_v12  ;;  %v3228_v23 = vcombine.low %v1004_v11, %v1008_v12  ;;  %v3220_v30 = vcombine.low %v996_v20, %v1000_v21  ;;  %v1499_v48 = vld [vmem:[#allocation2 + $0x3c8] sm:$0xff]  ;;  %v1494_v10 = vld [vmem:[#allocation2 + $0x3a0] sm:$0xff] }
  0xd3   :  { %861 = vmatpush1.bf16.msra.mxu0 %v3202_v25  ;;  %914 = vmatpush1.bf16.msra.mxu1 %v3204_v46  ;;  %v1021_v25 = vld [vmem:[#allocation2 + $0x2d0] sm:$0xff]  ;;  %v1503_v61 = vld [vmem:[#allocation2 + $0x3e8] sm:$0xff] }
  0xd4   :  { %862 = vmatprep.subr.bf16.mxu0 %v3195_v26  ;;  %915 = vmatprep.subr.bf16.mxu1 %v3197_v3  ;;  %v1025_v46 = vld [vmem:[#allocation2 + $0x2f0] sm:$0xff]  ;;  %v1022_v26 = vld [vmem:[#allocation2 + $0x2d8] sm:$0xff]  ;;  %v3218_v3 = vcombine.low %v995_v19, %v999_v49  ;;  %v1491_v11 = vld [vmem:[#allocation2 + $0x388] sm:$0xff] }
  0xd5   :  { %788 = vmatprep.mubr.bf16.mxu0 %v3596_v0  ;;  %841 = vmatprep.mubr.bf16.mxu1 %v3596_v0  ;;  %v3247_v2 = vcombine.high %v1021_v25, %v1025_v46  ;;  %v1495_v12 = vld [vmem:[#allocation2 + $0x3a8] sm:$0xff]  ;;  %v1482_v19 = vld [vmem:[#allocation2 + $0x340] sm:$0xff] }
  0xd6   :  { %v1486_v49 = vld [vmem:[#allocation2 + $0x360] sm:$0xff]  ;;  %v1483_v20 = vld [vmem:[#allocation2 + $0x348] sm:$0xff] }
  0xd7   :  { %863 = vmatpush1.bf16.msra.mxu0 %v3194_v32  ;;  %916 = vmatpush1.bf16.msra.mxu1 %v3196_v33  ;;  %v1017_v32 = vld [vmem:[#allocation2 + $0x2b0] sm:$0xff]  ;;  %v1014_v33 = vld [vmem:[#allocation2 + $0x298] sm:$0xff]  ;;  %v1487_v21 = vld [vmem:[#allocation2 + $0x368] sm:$0xff] }
  0xd8   :  { %864 = vmatprep.subr.bf16.mxu0 %v3187_v1  ;;  %917 = vmatprep.subr.bf16.mxu1 %v3189_v36  ;;  %v1018_v1 = vld [vmem:[#allocation2 + $0x2b8] sm:$0xff]  ;;  %v3246_v36 = vcombine.low %v1021_v25, %v1025_v46  ;;  %v3239_v54 = vcombine.high %v1013_v8, %v1017_v32  ;;  %v1474_v25 = vld [vmem:[#allocation2 + $0x300] sm:$0xff] }
  0xd9   :  { %v3241_v43 = vcombine.high %v1014_v33, %v1018_v1  ;;  %v1478_v46 = vld [vmem:[#allocation2 + $0x320] sm:$0xff] }
  0xda   :  { %3207 = vmatmul.mubr.msk.bf16.gmra.mxu0 %vm361_vm6, %v3848_v51  ;;  %3209 = vmatmul.mubr.msk.bf16.gmra.mxu1 %vm361_vm6, %v3848_v51 }
  0xdb   :  { %865 = vmatpush1.bf16.msra.mxu0 %v3186_v47  ;;  %918 = vmatpush1.bf16.msra.mxu1 %v3188_v50  ;;  %v1010_v47 = vld [vmem:[#allocation2 + $0x278] sm:$0xff]  ;;  %v3238_v50 = vcombine.low %v1013_v8, %v1017_v32  ;;  %v1504_v8 = vld [vmem:[#allocation2 + $0x3f0] sm:$0xff] }
  0xdc   :  { %866 = vmatprep.subr.bf16.mxu0 %v3179_v52  ;;  %919 = vmatprep.subr.bf16.mxu1 %v3181_v53  ;;  %v3231_v52 = vcombine.high %v1005_v29, %v1009_v60  ;;  %v3233_v53 = vcombine.high %v1006_v44, %v1010_v47  ;;  %v1501_v32 = vld [vmem:[#allocation2 + $0x3d8] sm:$0xff] }
  0xdd   :  { %884 = vmatprep.mubr.bf16.mxu0 %v3596_v0  ;;  %937 = vmatprep.mubr.bf16.mxu1 %v3596_v0 }
  0xdf   :  { %867 = vmatpush1.bf16.msra.mxu0 %v3178_v57  ;;  %920 = vmatpush1.bf16.msra.mxu1 %v3180_v58  ;;  %v3230_v57 = vcombine.low %v1005_v29, %v1009_v60  ;;  %v3232_v58 = vcombine.low %v1006_v44, %v1010_v47  ;;  %v1496_v29 = vld [vmem:[#allocation2 + $0x3b0] sm:$0xff]  ;;  %v1493_v60 = vld [vmem:[#allocation2 + $0x398] sm:$0xff] }
  0xe0   :  { %1201 = vmatprep.subr.bf16.mxu0 %v3243_v59  ;;  %1254 = vmatprep.subr.bf16.mxu1 %v3245_v34  ;;  %v3223_v59 = vcombine.high %v997_v38, %v1001_v55  ;;  %v3225_v34 = vcombine.high %v998_v35, %v1002_v56  ;;  %v1497_v44 = vld [vmem:[#allocation2 + $0x3b8] sm:$0xff] }
  0xe2   :  { %3210 = vmatmul.mubr.msk.bf16.vlgmr.msra.gmra.mxu0 %vm361_vm6, %v3832_v27  ;;  %3212 = vmatmul.mubr.msk.bf16.vlgmr.msra.gmra.mxu1 %vm361_vm6, %v3832_v27  ;;  %v1026_v27 = vld [vmem:[#allocation2 + $0x2f8] sm:$0xff] }
  0xe3   :  { %1202 = vmatpush1.bf16.msra.mxu0 %v3242_v62  ;;  %1255 = vmatpush1.bf16.msra.mxu1 %v3244_v63  ;;  %v3249_v31 = vcombine.high %v1022_v26, %v1026_v27  ;;  %v3248_v37 = vcombine.low %v1022_v26, %v1026_v27  ;;  %v3222_v62 = vcombine.low %v997_v38, %v1001_v55  ;;  %v1475_v26 = vld [vmem:[#allocation2 + $0x308] sm:$0xff]  ;;  %v1485_v38 = vld [vmem:[#allocation2 + $0x358] sm:$0xff] }
  0xe4   :  { %1203 = vmatprep.subr.bf16.mxu0 %v3235_v4  ;;  %1256 = vmatprep.subr.bf16.mxu1 %v3237_v5  ;;  %v3224_v63 = vcombine.low %v998_v35, %v1002_v56  ;;  %v3287_v4 = vcombine.high %v1498_v40, %v1502_v41  ;;  %v3289_v5 = vcombine.high %v1499_v48, %v1503_v61  ;;  %v1479_v27 = vld [vmem:[#allocation2 + $0x328] sm:$0xff]  ;;  %v1489_v55 = vld [vmem:[#allocation2 + $0x378] sm:$0xff] }
  0xe5   :  { %894 = vmatprep.mubr.bf16.mxu0 %v3596_v0  ;;  %947 = vmatprep.mubr.bf16.mxu1 %v3596_v0  ;;  %v3284_v56 = vcombine.low %v1493_v60, %v1497_v44 }
  0xe7   :  { %1204 = vmatpush1.bf16.msra.mxu0 %v3234_v14  ;;  %1257 = vmatpush1.bf16.msra.mxu1 %v3236_v15  ;;  %v3286_v14 = vcombine.low %v1498_v40, %v1502_v41  ;;  %v3288_v15 = vcombine.low %v1499_v48, %v1503_v61  ;;  %v1477_v40 = vld [vmem:[#allocation2 + $0x318] sm:$0xff]  ;;  %v3276_v61 = vcombine.low %v1485_v38, %v1489_v55 }
  0xe8   :  { %1205 = vmatprep.subr.bf16.mxu0 %v3227_v17  ;;  %1258 = vmatprep.subr.bf16.mxu1 %v3229_v18  ;;  %v3279_v17 = vcombine.high %v1490_v7, %v1494_v10  ;;  %v3281_v18 = vcombine.high %v1491_v11, %v1495_v12  ;;  %v1481_v41 = vld [vmem:[#allocation2 + $0x338] sm:$0xff] }
  0xea   :  { %3211 = vmatmul.mubr.msk.bf16.gmra.mxu0 %vm361_vm6, %v3848_v51  ;;  %3213 = vmatmul.mubr.msk.bf16.gmra.mxu1 %vm361_vm6, %v3848_v51  ;;  %v3240_v51 = vcombine.low %v1014_v33, %v1018_v1  ;;  %v1505_v33 = vld [vmem:[#allocation2 + $0x3f8] sm:$0xff]  ;;  %v3262_v1 = vcombine.low %v1474_v25, %v1478_v46 }
  0xeb   :  { %1206 = vmatpush1.bf16.msra.mxu0 %v3226_v22  ;;  %1259 = vmatpush1.bf16.msra.mxu1 %v3228_v23  ;;  %v3278_v22 = vcombine.low %v1490_v7, %v1494_v10  ;;  %v3280_v23 = vcombine.low %v1491_v11, %v1495_v12  ;;  %v1978_v7 = vld [vmem:[#allocation2 + $0x4c8] sm:$0xff]  ;;  %v3268_v12 = vcombine.low %v1477_v40, %v1481_v41 }
  0xec   :  { %1207 = vmatprep.subr.bf16.mxu0 %v3219_v24  ;;  %1260 = vmatprep.subr.bf16.mxu1 %v3221_v42  ;;  %v3271_v24 = vcombine.high %v1482_v19, %v1486_v49  ;;  %v3273_v42 = vcombine.high %v1483_v20, %v1487_v21  ;;  %v1982_v10 = vld [vmem:[#allocation2 + $0x4e8] sm:$0xff] }
  0xed   :  { %1225 = vmatprep.mubr.bf16.mxu0 %v3596_v0  ;;  %1278 = vmatprep.mubr.bf16.mxu1 %v3596_v0 }
  0xef   :  { %1208 = vmatpush1.bf16.msra.mxu0 %v3218_v3  ;;  %1261 = vmatpush1.bf16.msra.mxu1 %v3220_v30  ;;  %v3270_v3 = vcombine.low %v1482_v19, %v1486_v49  ;;  %v3263_v30 = vcombine.high %v1474_v25, %v1478_v46  ;;  %v1970_v19 = vld [vmem:[#allocation2 + $0x488] sm:$0xff] }
  0xf0   :  { %1307 = vmatprep.subr.bf16.mxu0 %v3247_v2  ;;  %1360 = vmatprep.subr.bf16.mxu1 %v3249_v31  ;;  %v3265_v2 = vcombine.high %v1475_v26, %v1479_v27  ;;  %v1500_v31 = vld [vmem:[#allocation2 + $0x3d0] sm:$0xff]  ;;  %v1974_v49 = vld [vmem:[#allocation2 + $0x4a8] sm:$0xff] }
  0xf1   :  { %v3290_v47 = vcombine.low %v1500_v31, %v1504_v8  ;;  %v1962_v25 = vld [vmem:[#allocation2 + $0x448] sm:$0xff] }
  0xf2   :  { %3250 = vmatmul.mubr.msk.bf16.vlgmr.msra.gmra.mxu0 %vm361_vm6, %v3776_v16  ;;  %3252 = vmatmul.mubr.msk.bf16.vlgmr.msra.gmra.mxu1 %vm361_vm6, %v3776_v16  ;;  %v1966_v46 = vld [vmem:[#allocation2 + $0x468] sm:$0xff] }
  0xf3   :  { %1308 = vmatpush1.bf16.msra.mxu0 %v3246_v36  ;;  %1361 = vmatpush1.bf16.msra.mxu1 %v3248_v37  ;;  %v3264_v36 = vcombine.low %v1475_v26, %v1479_v27  ;;  %v3291_v37 = vcombine.high %v1500_v31, %v1504_v8  ;;  %v3324_v27 = vcombine.low %v1970_v19, %v1974_v49  ;;  %v1954_v31 = vld [vmem:[#allocation2 + $0x408] sm:$0xff] }
  0xf4   :  { %1309 = vmatprep.subr.bf16.mxu0 %v3239_v54  ;;  %1362 = vmatprep.subr.bf16.mxu1 %v3241_v43  ;;  %v3293_v54 = vcombine.high %v1501_v32, %v1505_v33  ;;  %v1492_v43 = vld [vmem:[#allocation2 + $0x390] sm:$0xff]  ;;  %v1958_v8 = vld [vmem:[#allocation2 + $0x428] sm:$0xff] }
  0xf5   :  { %1235 = vmatprep.mubr.bf16.mxu0 %v3596_v0  ;;  %1288 = vmatprep.mubr.bf16.mxu1 %v3596_v0  ;;  %v3282_v35 = vcombine.low %v1492_v43, %v1496_v29 }
  0xf7   :  { %1310 = vmatpush1.bf16.msra.mxu0 %v3238_v50  ;;  %1363 = vmatpush1.bf16.msra.mxu1 %v3240_v51  ;;  %v3283_v50 = vcombine.high %v1492_v43, %v1496_v29  ;;  %v3285_v51 = vcombine.high %v1493_v60, %v1497_v44  ;;  %v1984_v43 = vld [vmem:[#allocation2 + $0x4f8] sm:$0xff]  ;;  %v3308_v60 = vcombine.low %v1954_v31, %v1958_v8 }
  0xf8   :  { %1311 = vmatprep.subr.bf16.mxu0 %v3231_v52  ;;  %1364 = vmatprep.subr.bf16.mxu1 %v3233_v53  ;;  %v1484_v52 = vld [vmem:[#allocation2 + $0x350] sm:$0xff] }
  0xf9   :  { %v1488_v53 = vld [vmem:[#allocation2 + $0x370] sm:$0xff] }
  0xfa   :  { %3251 = vmatmul.mubr.msk.bf16.gmra.mxu0 %vm361_vm6, %v3784_v28  ;;  %3253 = vmatmul.mubr.msk.bf16.gmra.mxu1 %vm361_vm6, %v3784_v28  ;;  %v3274_v48 = vcombine.low %v1484_v52, %v1488_v53 }
  0xfb   :  { %1312 = vmatpush1.bf16.msra.mxu0 %v3230_v57  ;;  %1365 = vmatpush1.bf16.msra.mxu1 %v3232_v58  ;;  %v3275_v57 = vcombine.high %v1484_v52, %v1488_v53  ;;  %v3277_v58 = vcombine.high %v1485_v38, %v1489_v55  ;;  %v1976_v52 = vld [vmem:[#allocation2 + $0x4b8] sm:$0xff] }
  0xfc   :  { %1313 = vmatprep.subr.bf16.mxu0 %v3223_v59  ;;  %1366 = vmatprep.subr.bf16.mxu1 %v3225_v34  ;;  %v1476_v59 = vld [vmem:[#allocation2 + $0x310] sm:$0xff] }
  0xfd   :  { %1331 = vmatprep.mubr.bf16.mxu0 %v3596_v0  ;;  %1384 = vmatprep.mubr.bf16.mxu1 %v3596_v0  ;;  %v1480_v34 = vld [vmem:[#allocation2 + $0x330] sm:$0xff] }
  0xfe   :  { %v3266_v11 = vcombine.low %v1476_v59, %v1480_v34 }
  0xff   :  { %1314 = vmatpush1.bf16.msra.mxu0 %v3222_v62  ;;  %1367 = vmatpush1.bf16.msra.mxu1 %v3224_v63  ;;  %v3267_v62 = vcombine.high %v1476_v59, %v1480_v34  ;;  %v3269_v63 = vcombine.high %v1477_v40, %v1481_v41 }
 0x100   :  { %1680 = vmatprep.subr.bf16.mxu0 %v3287_v4  ;;  %1733 = vmatprep.subr.bf16.mxu1 %v3289_v5  ;;  %v1977_v4 = vld [vmem:[#allocation2 + $0x4c0] sm:$0xff] }
 0x101   :  { %v1981_v5 = vld [vmem:[#allocation2 + $0x4e0] sm:$0xff] }
 0x102   :  { %3254 = vmatmul.mubr.msk.bf16.vlgmr.msra.gmra.mxu0 %vm361_vm6, %v3776_v16  ;;  %3256 = vmatmul.mubr.msk.bf16.vlgmr.msra.gmra.mxu1 %vm361_vm6, %v3776_v16  ;;  %v3272_v16 = vcombine.low %v1483_v20, %v1487_v21  ;;  %v3330_v20 = vcombine.low %v1977_v4, %v1981_v5  ;;  %v3332_v21 = vcombine.low %v1978_v7, %v1982_v10 }
 0x103   :  { %1681 = vmatpush1.bf16.msra.mxu0 %v3286_v14  ;;  %1734 = vmatpush1.bf16.msra.mxu1 %v3288_v15  ;;  %v3331_v14 = vcombine.high %v1977_v4, %v1981_v5  ;;  %v3333_v15 = vcombine.high %v1978_v7, %v1982_v10 }
 0x104   :  { %1682 = vmatprep.subr.bf16.mxu0 %v3279_v17  ;;  %1735 = vmatprep.subr.bf16.mxu1 %v3281_v18  ;;  %v1969_v17 = vld [vmem:[#allocation2 + $0x480] sm:$0xff] }
 0x105   :  { %1341 = vmatprep.mubr.bf16.mxu0 %v3596_v0  ;;  %1394 = vmatprep.mubr.bf16.mxu1 %v3596_v0  ;;  %v1973_v18 = vld [vmem:[#allocation2 + $0x4a0] sm:$0xff] }
 0x106   :  { %v3322_v26 = vcombine.low %v1969_v17, %v1973_v18 }
 0x107   :  { %1683 = vmatpush1.bf16.msra.mxu0 %v3278_v22  ;;  %1736 = vmatpush1.bf16.msra.mxu1 %v3280_v23  ;;  %v3323_v22 = vcombine.high %v1969_v17, %v1973_v18  ;;  %v3325_v23 = vcombine.high %v1970_v19, %v1974_v49 }
 0x108   :  { %1684 = vmatprep.subr.bf16.mxu0 %v3271_v24  ;;  %1737 = vmatprep.subr.bf16.mxu1 %v3273_v42  ;;  %v1961_v24 = vld [vmem:[#allocation2 + $0x440] sm:$0xff] }
 0x109   :  { %v1965_v42 = vld [vmem:[#allocation2 + $0x460] sm:$0xff] }
 0x10a   :  { %3255 = vmatmul.mubr.msk.bf16.gmra.mxu0 %vm361_vm6, %v3784_v28  ;;  %3257 = vmatmul.mubr.msk.bf16.gmra.mxu1 %vm361_vm6, %v3784_v28  ;;  %v3292_v28 = vcombine.low %v1501_v32, %v1505_v33  ;;  %v3314_v32 = vcombine.low %v1961_v24, %v1965_v42 }
 0x10b   :  { %1685 = vmatpush1.bf16.msra.mxu0 %v3270_v3  ;;  %1738 = vmatpush1.bf16.msra.mxu1 %v3272_v16  ;;  %v3315_v3 = vcombine.high %v1961_v24, %v1965_v42  ;;  %v3317_v16 = vcombine.high %v1962_v25, %v1966_v46  ;;  %v2691_v42 = vld [vmem:[#allocation7 + $0xf0] sm:$0xff] }
 0x10c   :  { %1686 = vmatprep.subr.bf16.mxu0 %v3263_v30  ;;  %1739 = vmatprep.subr.bf16.mxu1 %v3265_v2  ;;  %v1953_v30 = vld [vmem:[#allocation2 + $0x400] sm:$0xff] }
 0x10d   :  { %1704 = vmatprep.mubr.bf16.mxu0 %v3596_v0  ;;  %1757 = vmatprep.mubr.bf16.mxu1 %v3596_v0  ;;  %v1957_v2 = vld [vmem:[#allocation2 + $0x420] sm:$0xff] }
 0x10e   :  { %v3307_v33 = vcombine.high %v1953_v30, %v1957_v2  ;;  %v3306_v29 = vcombine.low %v1953_v30, %v1957_v2  ;;  %v2722_v30 = vld [vmem:[#allocation7 + $0x1e8] sm:$0xff] }
 0x10f   :  { %1687 = vmatpush1.bf16.msra.mxu0 %v3262_v1  ;;  %1740 = vmatpush1.bf16.msra.mxu1 %v3264_v36  ;;  %v3309_v1 = vcombine.high %v1954_v31, %v1958_v8  ;;  %v1979_v36 = vld [vmem:[#allocation2 + $0x4d0] sm:$0xff]  ;;  %v2674_v2 = vld [vmem:[#allocation7 + $0x68] sm:$0xff] }
 0x110   :  { %1786 = vmatprep.subr.bf16.mxu0 %v3291_v37  ;;  %1839 = vmatprep.subr.bf16.mxu1 %v3293_v54  ;;  %v1983_v37 = vld [vmem:[#allocation2 + $0x4f0] sm:$0xff]  ;;  %v1980_v54 = vld [vmem:[#allocation2 + $0x4d8] sm:$0xff]  ;;  %v2706_v31 = vld [vmem:[#allocation7 + $0x168] sm:$0xff] }
 0x111   :  { %v3335_v44 = vcombine.high %v1979_v36, %v1983_v37  ;;  %v3334_v53 = vcombine.low %v1979_v36, %v1983_v37  ;;  %v2721_v36 = vld [vmem:[#allocation7 + $0x1e0] sm:$0xff] }
 0x112   :  { %3294 = vmatmul.mubr.msk.bf16.vlgmr.msra.gmra.mxu0 %vm361_vm6, %v3794_v45  ;;  %3296 = vmatmul.mubr.msk.bf16.vlgmr.msra.gmra.mxu1 %vm361_vm6, %v3794_v45 }
 0x113   :  { %1787 = vmatpush1.bf16.msra.mxu0 %v3290_v47  ;;  %1840 = vmatpush1.bf16.msra.mxu1 %v3292_v28  ;;  %v3337_v47 = vcombine.high %v1980_v54, %v1984_v43  ;;  %v1971_v28 = vld [vmem:[#allocation2 + $0x490] sm:$0xff] }
 0x114   :  { %1788 = vmatprep.subr.bf16.mxu0 %v3283_v50  ;;  %1841 = vmatprep.subr.bf16.mxu1 %v3285_v51  ;;  %v1975_v50 = vld [vmem:[#allocation2 + $0x4b0] sm:$0xff]  ;;  %v1972_v51 = vld [vmem:[#allocation2 + $0x498] sm:$0xff] }
 0x115   :  { %1714 = vmatprep.mubr.bf16.mxu0 %v3596_v0  ;;  %1767 = vmatprep.mubr.bf16.mxu1 %v3596_v0  ;;  %v3327_v38 = vcombine.high %v1971_v28, %v1975_v50  ;;  %v3329_v55 = vcombine.high %v1972_v51, %v1976_v52  ;;  %v3326_v59 = vcombine.low %v1971_v28, %v1975_v50  ;;  %v2672_v50 = vld [vmem:[#allocation7 + $0x58] sm:$0xff] }
 0x116   :  { %v3328_v34 = vcombine.low %v1972_v51, %v1976_v52  ;;  %v2704_v51 = vld [vmem:[#allocation7 + $0x158] sm:$0xff] }
 0x117   :  { %1789 = vmatpush1.bf16.msra.mxu0 %v3282_v35  ;;  %1842 = vmatpush1.bf16.msra.mxu1 %v3284_v56  ;;  %v1963_v35 = vld [vmem:[#allocation2 + $0x450] sm:$0xff] }
 0x118   :  { %1790 = vmatprep.subr.bf16.mxu0 %v3275_v57  ;;  %1843 = vmatprep.subr.bf16.mxu1 %v3277_v58  ;;  %v1967_v56 = vld [vmem:[#allocation2 + $0x470] sm:$0xff]  ;;  %v1964_v57 = vld [vmem:[#allocation2 + $0x458] sm:$0xff] }
 0x119   :  { %v1968_v58 = vld [vmem:[#allocation2 + $0x478] sm:$0xff]  ;;  %v3319_v40 = vcombine.high %v1963_v35, %v1967_v56  ;;  %v3318_v4 = vcombine.low %v1963_v35, %v1967_v56  ;;  %v2703_v35 = vld [vmem:[#allocation7 + $0x150] sm:$0xff] }
 0x11a   :  { %3295 = vmatmul.mubr.msk.bf16.gmra.mxu0 %vm361_vm6, %v3802_v39  ;;  %3297 = vmatmul.mubr.msk.bf16.gmra.mxu1 %vm361_vm6, %v3802_v39  ;;  %v3321_v41 = vcombine.high %v1964_v57, %v1968_v58  ;;  %v3320_v5 = vcombine.low %v1964_v57, %v1968_v58  ;;  %v2686_v58 = vld [vmem:[#allocation7 + $0xc8] sm:$0xff] }
 0x11b   :  { %1791 = vmatpush1.bf16.msra.mxu0 %v3274_v48  ;;  %1844 = vmatpush1.bf16.msra.mxu1 %v3276_v61  ;;  %v1955_v48 = vld [vmem:[#allocation2 + $0x410] sm:$0xff] }
 0x11c   :  { %1792 = vmatprep.subr.bf16.mxu0 %v3267_v62  ;;  %1845 = vmatprep.subr.bf16.mxu1 %v3269_v63  ;;  %v1959_v61 = vld [vmem:[#allocation2 + $0x430] sm:$0xff]  ;;  %v1956_v62 = vld [vmem:[#allocation2 + $0x418] sm:$0xff] }
 0x11d   :  { %1810 = vmatprep.mubr.bf16.mxu0 %v3596_v0  ;;  %1863 = vmatprep.mubr.bf16.mxu1 %v3596_v0  ;;  %v1960_v63 = vld [vmem:[#allocation2 + $0x438] sm:$0xff]  ;;  %v3311_v7 = vcombine.high %v1955_v48, %v1959_v61 }
 0x11e   :  { %v3313_v10 = vcombine.high %v1956_v62, %v1960_v63 }
 0x11f   :  { %1793 = vmatpush1.bf16.msra.mxu0 %v3266_v11  ;;  %1846 = vmatpush1.bf16.msra.mxu1 %v3268_v12  ;;  %v3310_v11 = vcombine.low %v1955_v48, %v1959_v61  ;;  %v3312_v12 = vcombine.low %v1956_v62, %v1960_v63 }
 0x120   :  { %2159 = vmatprep.subr.bf16.mxu0 %v3331_v14  ;;  %2212 = vmatprep.subr.bf16.mxu1 %v3333_v15 }
 0x122   :  { %3298 = vmatmul.mubr.msk.bf16.vlgmr.msra.gmra.mxu0 %vm361_vm6, %v3794_v45  ;;  %3300 = vmatmul.mubr.msk.bf16.vlgmr.msra.gmra.mxu1 %vm361_vm6, %v3794_v45  ;;  %v3316_v45 = vcombine.low %v1962_v25, %v1966_v46  ;;  %v2723_v25 = vld [vmem:[#allocation7 + $0x1f0] sm:$0xff] }
 0x123   :  { %2160 = vmatpush1.bf16.msra.mxu0 %v3330_v20  ;;  %2213 = vmatpush1.bf16.msra.mxu1 %v3332_v21  ;;  %v2692_v20 = vld [vmem:[#allocation7 + $0xf8] sm:$0xff]  ;;  %v2675_v46 = vld [vmem:[#allocation7 + $0x70] sm:$0xff] }
 0x124   :  { %2161 = vmatprep.subr.bf16.mxu0 %v3323_v22  ;;  %2214 = vmatprep.subr.bf16.mxu1 %v3325_v23  ;;  %v2724_v21 = vld [vmem:[#allocation7 + $0x1f8] sm:$0xff] }
 0x125   :  { %1820 = vmatprep.mubr.bf16.mxu0 %v3596_v0  ;;  %1873 = vmatprep.mubr.bf16.mxu1 %v3596_v0  ;;  %v2708_v22 = vld [vmem:[#allocation7 + $0x178] sm:$0xff] }
 0x127   :  { %2162 = vmatpush1.bf16.msra.mxu0 %v3322_v26  ;;  %2215 = vmatpush1.bf16.msra.mxu1 %v3324_v27  ;;  %v2707_v26 = vld [vmem:[#allocation7 + $0x170] sm:$0xff] }
 0x128   :  { %2163 = vmatprep.subr.bf16.mxu0 %v3315_v3  ;;  %2216 = vmatprep.subr.bf16.mxu1 %v3317_v16  ;;  %v2690_v16 = vld [vmem:[#allocation7 + $0xe8] sm:$0xff] }
 0x12a   :  { %3299 = vmatmul.mubr.msk.bf16.gmra.mxu0 %vm361_vm6, %v3802_v39  ;;  %3301 = vmatmul.mubr.msk.bf16.gmra.mxu1 %vm361_vm6, %v3802_v39  ;;  %v3336_v39 = vcombine.low %v1980_v54, %v1984_v43  ;;  %v2673_v43 = vld [vmem:[#allocation7 + $0x60] sm:$0xff] }
 0x12b   :  { %2164 = vmatpush1.bf16.msra.mxu0 %v3314_v32  ;;  %2217 = vmatpush1.bf16.msra.mxu1 %v3316_v45 }
 0x12c   :  { %2165 = vmatprep.subr.bf16.mxu0 %v3307_v33  ;;  %2218 = vmatprep.subr.bf16.mxu1 %v3309_v1  ;;  %v2689_v1 = vld [vmem:[#allocation7 + $0xe0] sm:$0xff] }
 0x12d   :  { %2183 = vmatprep.mubr.bf16.mxu0 %v3596_v0  ;;  %2236 = vmatprep.mubr.bf16.mxu1 %v3596_v0 }
 0x12f   :  { %2166 = vmatpush1.bf16.msra.mxu0 %v3306_v29  ;;  %2219 = vmatpush1.bf16.msra.mxu1 %v3308_v60  ;;  %v2705_v29 = vld [vmem:[#allocation7 + $0x160] sm:$0xff]  ;;  %v2688_v60 = vld [vmem:[#allocation7 + $0xd8] sm:$0xff] }
 0x130   :  { %2265 = vmatprep.subr.bf16.mxu0 %v3335_v44  ;;  %2318 = vmatprep.subr.bf16.mxu1 %v3337_v47  ;;  %v2720_v44 = vld [vmem:[#allocation7 + $0x1d8] sm:$0xff] }
 0x132   :  { %3338 = vmatmul.mubr.msk.bf16.vlgmr.msra.gmra.mxu0 %vm361_vm6, %v3816_v13  ;;  %3340 = vmatmul.mubr.msk.bf16.vlgmr.msra.gmra.mxu1 %vm361_vm6, %v3816_v13 }
 0x133   :  { %2266 = vmatpush1.bf16.msra.mxu0 %v3334_v53  ;;  %2319 = vmatpush1.bf16.msra.mxu1 %v3336_v39  ;;  %v2687_v39 = vld [vmem:[#allocation7 + $0xd0] sm:$0xff] }
 0x134   :  { %2267 = vmatprep.subr.bf16.mxu0 %v3327_v38  ;;  %2320 = vmatprep.subr.bf16.mxu1 %v3329_v55  ;;  %v2719_v38 = vld [vmem:[#allocation7 + $0x1d0] sm:$0xff] }
 0x135   :  { %2193 = vmatprep.mubr.bf16.mxu0 %v3596_v0  ;;  %2246 = vmatprep.mubr.bf16.mxu1 %v3596_v0  ;;  %v2671_v55 = vld [vmem:[#allocation7 + $0x50] sm:$0xff] }
 0x137   :  { %2268 = vmatpush1.bf16.msra.mxu0 %v3326_v59  ;;  %2321 = vmatpush1.bf16.msra.mxu1 %v3328_v34  ;;  %v2718_v59 = vld [vmem:[#allocation7 + $0x1c8] sm:$0xff] }
 0x138   :  { %2269 = vmatprep.subr.bf16.mxu0 %v3319_v40  ;;  %2322 = vmatprep.subr.bf16.mxu1 %v3321_v41  ;;  %v2670_v34 = vld [vmem:[#allocation7 + $0x48] sm:$0xff] }
 0x139   :  { %v2702_v40 = vld [vmem:[#allocation7 + $0x148] sm:$0xff] }
 0x13a   :  { %3339 = vmatmul.mubr.msk.bf16.gmra.mxu0 %vm361_vm6, %v3834_v6  ;;  %3341 = vmatmul.mubr.msk.bf16.gmra.mxu1 %vm361_vm6, %v3834_v6 }
 0x13b   :  { %2270 = vmatpush1.bf16.msra.mxu0 %v3318_v4  ;;  %2323 = vmatpush1.bf16.msra.mxu1 %v3320_v5  ;;  %v2685_v5 = vld [vmem:[#allocation7 + $0xc0] sm:$0xff] }
 0x13c   :  { %2271 = vmatprep.subr.bf16.mxu0 %v3311_v7  ;;  %2324 = vmatprep.subr.bf16.mxu1 %v3313_v10  ;;  %v2717_v7 = vld [vmem:[#allocation7 + $0x1c0] sm:$0xff] }
 0x13d   :  { %2289 = vmatprep.mubr.bf16.mxu0 %v3596_v0  ;;  %2342 = vmatprep.mubr.bf16.mxu1 %v3596_v0  ;;  %v2669_v10 = vld [vmem:[#allocation7 + $0x40] sm:$0xff] }
 0x13f   :  { %2272 = vmatpush1.bf16.msra.mxu0 %v3310_v11  ;;  %2325 = vmatpush1.bf16.msra.mxu1 %v3312_v12 }
 0x140   :  { %3347 = vmatprep.subr.mxu0 %v2692_v20  ;;  %3382 = vmatprep.subr.mxu1 %v2724_v21  ;;  %v2701_v20 = vld [vmem:[#allocation7 + $0x140] sm:$0xff]  ;;  %v2684_v21 = vld [vmem:[#allocation7 + $0xb8] sm:$0xff] }
 0x142   :  { %3342 = vmatmul.mubr.msk.bf16.vlgmr.msra.gmra.mxu0 %vm361_vm6, %v3816_v13  ;;  %3344 = vmatmul.mubr.msk.bf16.vlgmr.msra.gmra.mxu1 %vm361_vm6, %v3816_v13 }
 0x143   :  { %2299 = vmatprep.mubr.bf16.mxu0 %v3596_v0  ;;  %2352 = vmatprep.mubr.bf16.mxu1 %v3596_v0 }
 0x144   :  { %3383 = vmatpush3.msra.mxu1 %v2708_v22  ;;  %v2668_v22 = vld [vmem:[#allocation7 + $0x38] sm:$0xff] }
 0x145   :  { %3384 = vmatprep.subr.mxu1 %v2723_v25 }
 0x146   :  { %3385 = vmatpush3.msra.mxu1 %v2707_v26  ;;  %v2683_v26 = vld [vmem:[#allocation7 + $0xb0] sm:$0xff] }
 0x147   :  { %3386 = vmatprep.subr.mxu1 %v2722_v30 }
 0x148   :  { %3387 = vmatpush3.msra.mxu1 %v2706_v31  ;;  %v2667_v31 = vld [vmem:[#allocation7 + $0x30] sm:$0xff] }
 0x149   :  { %3388 = vmatprep.subr.mxu1 %v2721_v36 }
 0x14a   :  { %3343 = vmatmul.mubr.msk.bf16.gmra.mxu0 %vm361_vm6, %v3834_v6  ;;  %3345 = vmatmul.mubr.msk.bf16.gmra.mxu1 %vm361_vm6, %v3834_v6  ;;  %v2676_v6 = vld [vmem:[#allocation7 + $0x78] sm:$0xff]  ;;  %vm2812_vm6 = vcmask 1041409  }
 0x14b   :  { %3348 = vmatpush3.msra.mxu0 %v2676_v6  ;;  %3389 = vmatpush3.msra.mxu1 %v2705_v29  ;;  %v2716_v6 = vld [vmem:[#allocation7 + $0x1b8] sm:$0xff]  ;;  %v2682_v29 = vld [vmem:[#allocation7 + $0xa8] sm:$0xff] }
 0x14c   :  { %3349 = vmatprep.subr.mxu0 %v2691_v42  ;;  %3390 = vmatprep.subr.mxu1 %v2720_v44  ;;  %v2700_v42 = vld [vmem:[#allocation7 + $0x138] sm:$0xff] }
 0x14d   :  { %3350 = vmatpush3.msra.mxu0 %v2675_v46  ;;  %3391 = vmatpush3.msra.mxu1 %v2704_v51 }
 0x14e   :  { %3351 = vmatprep.subr.mxu0 %v2690_v16  ;;  %3392 = vmatprep.subr.mxu1 %v2719_v38  ;;  %v2715_v16 = vld [vmem:[#allocation7 + $0x1b0] sm:$0xff] }
 0x14f   :  { %3352 = vmatpush3.msra.mxu0 %v2674_v2  ;;  %3393 = vmatpush3.msra.mxu1 %v2703_v35 }
 0x150   :  { %3353 = vmatprep.subr.mxu0 %v2689_v1  ;;  %3394 = vmatprep.subr.mxu1 %v2718_v59  ;;  %v2699_v1 = vld [vmem:[#allocation7 + $0x130] sm:$0xff]  ;;  %v2681_v59 = vld [vmem:[#allocation7 + $0xa0] sm:$0xff] }
 0x151   :  { %3354 = vmatpush3.msra.mxu0 %v2673_v43  ;;  %3395 = vmatpush3.msra.mxu1 %v2702_v40 }
 0x152   :  { %3355 = vmatprep.subr.mxu0 %v2688_v60  ;;  %3396 = vmatprep.subr.mxu1 %v2717_v7  ;;  %v2714_v60 = vld [vmem:[#allocation7 + $0x1a8] sm:$0xff]  ;;  %v2697_v7 = vld [vmem:[#allocation7 + $0x120] sm:$0xff] }
 0x153   :  { %3356 = vmatpush3.msra.mxu0 %v2672_v50  ;;  %3397 = vmatpush3.msra.mxu1 %v2701_v20  ;;  %v2712_v20 = vld [vmem:[#allocation7 + $0x198] sm:$0xff] }
 0x154   :  { %3357 = vmatprep.subr.mxu0 %v2687_v39  ;;  %3398 = vmatprep.subr.mxu1 %v2716_v6  ;;  %v2664_v6 = vld [vmem:[#allocation7 + $0x18] sm:$0xff] }
 0x155   :  { %3358 = vmatpush3.msra.mxu0 %v2671_v55  ;;  %3399 = vmatpush3.msra.mxu1 %v2700_v42 }
 0x156   :  { %3359 = vmatprep.subr.mxu0 %v2686_v58  ;;  %3400 = vmatprep.subr.mxu1 %v2715_v16  ;;  %v2663_v16 = vld [vmem:[#allocation7 + $0x10] sm:$0xff] }
 0x157   :  { %3360 = vmatpush3.msra.mxu0 %v2670_v34  ;;  %3401 = vmatpush3.msra.mxu1 %v2699_v1  ;;  %v2713_v34 = vld [vmem:[#allocation7 + $0x1a0] sm:$0xff] }
 0x158   :  { %3361 = vmatprep.subr.mxu0 %v2685_v5  ;;  %3402 = vmatprep.subr.mxu1 %v2714_v60  ;;  %v2662_v60 = vld [vmem:[#allocation7 + $0x8] sm:$0xff] }
 0x159   :  { %3362 = vmatpush3.msra.mxu0 %v2669_v10 }
 0x15a   :  { %3363 = vmatprep.subr.mxu0 %v2684_v21 }
 0x15b   :  { %3364 = vmatpush3.msra.mxu0 %v2668_v22  ;;  %v2696_v22 = vld [vmem:[#allocation7 + $0x118] sm:$0xff] }
 0x15c   :  { %3365 = vmatprep.subr.mxu0 %v2683_v26 }
 0x15d   :  { %3366 = vmatpush3.msra.mxu0 %v2667_v31  ;;  %v2695_v31 = vld [vmem:[#allocation7 + $0x110] sm:$0xff] }
 0x15e   :  { %3367 = vmatprep.subr.mxu0 %v2682_v29 }
 0x172   :  { %v3938_v14 = vpop.f32.mrf.mxu0  ;;  %v3940_v15 = vpop.f32.mrf.mxu1 }
 0x174   :  { %v3942_v17 = vpop.f32.mrf.mxu0  ;;  %v3944_v18 = vpop.f32.mrf.mxu1 }
 0x176   :  { %v3946_v19 = vpop.f32.mrf.mxu0  ;;  %v3948_v13 = vpop.f32.mrf.mxu1 }
 0x178   :  { %v3950_v49 = vpop.f32.mrf.mxu0  ;;  %v3952_v0 = vpop.f32.mrf.mxu1 }
 0x17a   :  { %v3954_v23 = vpop.f32.mrf.mxu0  ;;  %v3956_v24 = vpop.f32.mrf.mxu1 }
 0x17c   :  { %v3958_v27 = vpop.f32.mrf.mxu0  ;;  %v3960_v3 = vpop.f32.mrf.mxu1 }
 0x17e   :  { %v3962_v8 = vpop.f32.mrf.mxu0  ;;  %v3964_v32 = vpop.f32.mrf.mxu1 }
 0x180   :  { %v3966_v45 = vpop.f32.mrf.mxu0  ;;  %v3968_v33 = vpop.f32.mrf.mxu1 }
 0x182   :  { %v3970_v37 = vpop.f32.mrf.mxu0  ;;  %v3972_v54 = vpop.f32.mrf.mxu1 }
 0x184   :  { %v3974_v47 = vpop.f32.mrf.mxu0  ;;  %v3976_v28 = vpop.f32.mrf.mxu1 }
 0x186   :  { %v3978_v52 = vpop.f32.mrf.mxu0  ;;  %v3980_v53 = vpop.f32.mrf.mxu1 }
 0x188   :  { %v3982_v56 = vpop.f32.mrf.mxu0  ;;  %v3984_v57 = vpop.f32.mrf.mxu1 }
 0x18a   :  { %v3986_v41 = vpop.f32.mrf.mxu0  ;;  %v3988_v48 = vpop.f32.mrf.mxu1 }
 0x18c   :  { %v3990_v61 = vpop.f32.mrf.mxu0  ;;  %v3992_v62 = vpop.f32.mrf.mxu1 }
 0x18e   :  { %v3994_v63 = vpop.f32.mrf.mxu0  ;;  %v3996_v4 = vpop.f32.mrf.mxu1 }
 0x190   :  { %v3998_v11 = vpop.f32.mrf.mxu0  ;;  %v4000_v12 = vpop.f32.mrf.mxu1 }
 0x192   :  { %v780_v25 = vpop.f32.mrf.mxu0  ;;  %v833_v46 = vpop.f32.mrf.mxu1 }
 0x193   :  { %v4003_v30 = vadd.f32 %v780_v25, %v3938_v14  ;;  %v4006_v2 = vadd.f32 %v833_v46, %v3940_v15  ;;  %v2666_v14 = vld [vmem:[#allocation7 + $0x28] sm:$0xff] }
 0x194   :  { %v782_v36 = vpop.f32.mrf.mxu0  ;;  %v835_v43 = vpop.f32.mrf.mxu1  ;;  %v2698_v15 = vld [vmem:[#allocation7 + $0x128] sm:$0xff]  ;;  %3368 = vmatpush3.msra.mxu0 %v2666_v14 }
 0x195   :  { %v4009_v44 = vadd.f32 %v782_v36, %v3942_v17  ;;  %v4012_v50 = vadd.f32 %v835_v43, %v3944_v18  ;;  %3403 = vmatpush3.msra.mxu1 %v2698_v15  ;;  %3369 = vmatprep.subr.mxu0 %v2681_v59  ;;  %v2694_v14 = vld [vmem:[#allocation7 + $0x108] sm:$0xff]  ;;  %v2693_v59 = vld [vmem:[#allocation7 + $0x100] sm:$0xff] }
 0x196   :  { %v784_v51 = vpop.f32.mrf.mxu0  ;;  %v837_v39 = vpop.f32.mrf.mxu1  ;;  %3404 = vmatprep.subr.mxu1 %v2713_v34 }
 0x197   :  { %v4015_v38 = vadd.f32 %v784_v51, %v3946_v19  ;;  %v4018_v55 = vadd.f32 %v837_v39, %v3948_v13  ;;  %v2665_v19 = vld [vmem:[#allocation7 + $0x20] sm:$0xff]  ;;  %3405 = vmatpush3.msra.mxu1 %v2697_v7 }
 0x198   :  { %v786_v17 = vpop.f32.mrf.mxu0  ;;  %v839_v35 = vpop.f32.mrf.mxu1  ;;  %3370 = vmatpush3.msra.mxu0 %v2665_v19  ;;  %3406 = vmatprep.subr.mxu1 %v2712_v20 }
 0x199   :  { %v4021_v18 = vadd.f32 %v786_v17, %v3950_v49  ;;  %v4024_v58 = vadd.f32 %v839_v35, %v3952_v0  ;;  %v2680_v49 = vld [vmem:[#allocation7 + $0x98] sm:$0xff]  ;;  %3407 = vmatpush3.msra.mxu1 %v2696_v22  ;;  %v2661_v35 = vld [vmem:[#allocation7] sm:$0xff] }
 0x19a   :  { %v790_v40 = vpop.f32.mrf.mxu0  ;;  %v843_v5 = vpop.f32.mrf.mxu1  ;;  %3371 = vmatprep.subr.mxu0 %v2680_v49  ;;  %v2788_v22 = vld [vmem:[#allocation7 + $0x3f8] sm:$0xff] }
 0x19b   :  { %v4027_v13 = vadd.f32 %v790_v40, %v3954_v23  ;;  %v4030_v10 = vadd.f32 %v843_v5, %v3956_v24  ;;  %3372 = vmatpush3.msra.mxu0 %v2664_v6  ;;  %v2679_v23 = vld [vmem:[#allocation7 + $0x90] sm:$0xff] }
 0x19c   :  { %v792_v0 = vpop.f32.mrf.mxu0  ;;  %v845_v21 = vpop.f32.mrf.mxu1  ;;  %v2711_v24 = vld [vmem:[#allocation7 + $0x190] sm:$0xff]  ;;  %3373 = vmatprep.subr.mxu0 %v2679_v23 }
 0x19d   :  { %v4033_v42 = vadd.f32 %v792_v0, %v3958_v27  ;;  %v4036_v25 = vadd.f32 %v845_v21, %v3960_v3  ;;  %3408 = vmatprep.subr.mxu1 %v2711_v24  ;;  %3374 = vmatpush3.msra.mxu0 %v2663_v16  ;;  %v2678_v27 = vld [vmem:[#allocation7 + $0x88] sm:$0xff] }
 0x19e   :  { %v794_v46 = vpop.f32.mrf.mxu0  ;;  %v847_v26 = vpop.f32.mrf.mxu1  ;;  %3409 = vmatpush3.msra.mxu1 %v2695_v31  ;;  %v2710_v3 = vld [vmem:[#allocation7 + $0x188] sm:$0xff]  ;;  %3375 = vmatprep.subr.mxu0 %v2678_v27 }
 0x19f   :  { %v4039_v1 = vadd.f32 %v794_v46, %v3962_v8  ;;  %v4042_v36 = vadd.f32 %v847_v26, %v3964_v32  ;;  %3410 = vmatprep.subr.mxu1 %v2710_v3  ;;  %3376 = vmatpush3.msra.mxu0 %v2662_v60  ;;  %v2677_v8 = vld [vmem:[#allocation7 + $0x80] sm:$0xff] }
 0x1a0   :  { %v796_v43 = vpop.f32.mrf.mxu0  ;;  %v849_v29 = vpop.f32.mrf.mxu1  ;;  %3411 = vmatpush3.msra.mxu1 %v2694_v14  ;;  %v2709_v32 = vld [vmem:[#allocation7 + $0x180] sm:$0xff]  ;;  %3377 = vmatprep.subr.mxu0 %v2677_v8 }
 0x1a1   :  { %v4045_v15 = vadd.f32 %v796_v43, %v3966_v45  ;;  %v4048_v51 = vadd.f32 %v849_v29, %v3968_v33  ;;  %3412 = vmatprep.subr.mxu1 %v2709_v32  ;;  %3378 = vmatpush3.msra.mxu0 %v2661_v35 }
 0x1a2   :  { %v886_v39 = vpop.f32.mrf.mxu0  ;;  %v939_v17 = vpop.f32.mrf.mxu1  ;;  %3413 = vmatpush3.msra.mxu1 %v2693_v59 }
 0x1a3   :  { %v4051_v34 = vadd.f32 %v886_v39, %v3970_v37  ;;  %v4054_v40 = vadd.f32 %v939_v17, %v3972_v54  ;;  %3452 = vmatprep.subr.mxu1 %v2788_v22 }
 0x1a4   :  { %v888_v45 = vpop.f32.mrf.mxu0  ;;  %v941_v33 = vpop.f32.mrf.mxu1 }
 0x1a5   :  { %v4057_v5 = vadd.f32 %v888_v45, %v3974_v47  ;;  %v4060_v19 = vadd.f32 %v941_v33, %v3976_v28  ;;  %v2756_v47 = vld [vmem:[#allocation7 + $0x2f8] sm:$0xff] }
 0x1a6   :  { %v890_v7 = vpop.f32.mrf.mxu0  ;;  %v943_v49 = vpop.f32.mrf.mxu1  ;;  %3417 = vmatprep.subr.mxu0 %v2756_v47 }
 0x1a7   :  { %v4063_v20 = vadd.f32 %v890_v7, %v3978_v52  ;;  %v4066_v37 = vadd.f32 %v943_v49, %v3980_v53 }
 0x1a8   :  { %v892_v54 = vpop.f32.mrf.mxu0  ;;  %v945_v0 = vpop.f32.mrf.mxu1 }
 0x1a9   :  { %v4069_v21 = vadd.f32 %v892_v54, %v3982_v56  ;;  %v4072_v6 = vadd.f32 %v945_v0, %v3984_v57 }
 0x1aa   :  { %v896_v28 = vpop.f32.mrf.mxu0  ;;  %v949_v23 = vpop.f32.mrf.mxu1 }
 0x1ab   :  { %v897_v52 = vadd.f32 %v896_v28, %v3986_v41  ;;  %v950_v24 = vadd.f32 %v949_v23, %v3988_v48 }
 0x1ac   :  { %v898_v53 = vpop.f32.mrf.mxu0  ;;  %v951_v46 = vpop.f32.mrf.mxu1 }
 0x1ad   :  { %v899_v26 = vadd.f32 %v898_v53, %v3990_v61  ;;  %v952_v56 = vadd.f32 %v951_v46, %v3992_v62 }
 0x1ae   :  { %v900_v16 = vpop.f32.mrf.mxu0  ;;  %v953_v31 = vpop.f32.mrf.mxu1 }
 0x1af   :  { %v901_v57 = vadd.f32 %v900_v16, %v3994_v63  ;;  %v954_v27 = vadd.f32 %v953_v31, %v3996_v4 }
 0x1b0   :  { %v902_v3 = vpop.f32.mrf.mxu0  ;;  %v955_v43 = vpop.f32.mrf.mxu1 }
 0x1b1   :  { %v903_v29 = vadd.f32 %v902_v3, %v3998_v11  ;;  %v956_v41 = vadd.f32 %v955_v43, %v4000_v12 }
 0x1b2   :  { %v1227_v60 = vpop.f32.mrf.mxu0  ;;  %v1280_v48 = vpop.f32.mrf.mxu1 }
 0x1b3   :  { %v4083_v14 = vadd.f32 %v1227_v60, %v4003_v30  ;;  %v4086_v61 = vadd.f32 %v1280_v48, %v4006_v2 }
 0x1b4   :  { %v1229_v62 = vpop.f32.mrf.mxu0  ;;  %v1282_v8 = vpop.f32.mrf.mxu1 }
 0x1b5   :  { %v4089_v63 = vadd.f32 %v1229_v62, %v4009_v44  ;;  %v4092_v4 = vadd.f32 %v1282_v8, %v4012_v50 }
 0x1b6   :  { %v1231_v32 = vpop.f32.mrf.mxu0  ;;  %v1284_v11 = vpop.f32.mrf.mxu1 }
 0x1b7   :  { %v4095_v12 = vadd.f32 %v1231_v32, %v4015_v38  ;;  %v4098_v39 = vadd.f32 %v1284_v11, %v4018_v55 }
 0x1b8   :  { %v1233_v30 = vpop.f32.mrf.mxu0  ;;  %v1286_v17 = vpop.f32.mrf.mxu1 }
 0x1b9   :  { %v4101_v2 = vadd.f32 %v1233_v30, %v4021_v18  ;;  %v4104_v35 = vadd.f32 %v1286_v17, %v4024_v58 }
 0x1ba   :  { %v1237_v44 = vpop.f32.mrf.mxu0  ;;  %v1290_v59 = vpop.f32.mrf.mxu1 }
 0x1bb   :  { %v4107_v50 = vadd.f32 %v1237_v44, %v4027_v13  ;;  %v4110_v45 = vadd.f32 %v1290_v59, %v4030_v10 }
 0x1bc   :  { %v1239_v38 = vpop.f32.mrf.mxu0  ;;  %v1292_v33 = vpop.f32.mrf.mxu1 }
 0x1bd   :  { %v4113_v55 = vadd.f32 %v1239_v38, %v4033_v42  ;;  %v4116_v7 = vadd.f32 %v1292_v33, %v4036_v25 }
 0x1be   :  { %v1241_v18 = vpop.f32.mrf.mxu0  ;;  %v1294_v49 = vpop.f32.mrf.mxu1 }
 0x1bf   :  { %v4119_v58 = vadd.f32 %v1241_v18, %v4039_v1  ;;  %v4122_v54 = vadd.f32 %v1294_v49, %v4042_v36 }
 0x1c0   :  { %v4124_v13 = vpop.f32.mrf.mxu0  ;;  %v4126_v10 = vpop.f32.mrf.mxu1 }
 0x1c2   :  { %v1333_v0 = vpop.f32.mrf.mxu0  ;;  %v1386_v47 = vpop.f32.mrf.mxu1 }
 0x1c3   :  { %v1409_v42 = vadd.f32 %v1333_v0, %v4051_v34  ;;  %v1411_v22 = vadd.f32 %v1386_v47, %v4054_v40 }
 0x1c4   :  { %v1335_v25 = vpop.f32.mrf.mxu0  ;;  %v1388_v28 = vpop.f32.mrf.mxu1 }
 0x1c5   :  { %v4131_v23 = vadd.f32 %v1335_v25, %v4057_v5  ;;  %v4134_v1 = vadd.f32 %v1388_v28, %v4060_v19 }
 0x1c6   :  { %v1337_v36 = vpop.f32.mrf.mxu0  ;;  %v1390_v53 = vpop.f32.mrf.mxu1 }
 0x1c7   :  { %v4137_v46 = vadd.f32 %v1337_v36, %v4063_v20  ;;  %v4140_v16 = vadd.f32 %v1390_v53, %v4066_v37 }
 0x1c8   :  { %v1339_v31 = vpop.f32.mrf.mxu0  ;;  %v1392_v34 = vpop.f32.mrf.mxu1 }
 0x1c9   :  { %4442 = vst [vmem:[#allocation12_spill] sm:$0xff] %v4137_v46  ;;  %4443 = vst [vmem:[#allocation13_spill] sm:$0xff] %v4140_v16  ;;  %v4143_v40 = vadd.f32 %v1339_v31, %v4069_v21  ;;  %v4146_v3 = vadd.f32 %v1392_v34, %v4072_v6 }
 0x1ca   :  { %v1343_v5 = vpop.f32.mrf.mxu0  ;;  %v1396_v43 = vpop.f32.mrf.mxu1 }
 0x1cb   :  { %4444 = vst [vmem:[#allocation14_spill] sm:$0xff] %v4143_v40  ;;  %4445 = vst [vmem:[#allocation15_spill] sm:$0xff] %v4146_v3  ;;  %v4148_v19 = vadd.f32 %v1343_v5, %v897_v52  ;;  %v4150_v60 = vadd.f32 %v1396_v43, %v950_v24  ;;  %v2398_v43 = vshrl.u32 %v72_v9, 7 }
 0x1cc   :  { %v1345_v48 = vpop.f32.mrf.mxu0  ;;  %v1398_v20 = vpop.f32.mrf.mxu1 }
 0x1cd   :  { %4446 = vst [vmem:[#allocation16_spill] sm:$0xff] %v4148_v19  ;;  %4447 = vst [vmem:[#allocation17_spill] sm:$0xff] %v4150_v60  ;;  %v4152_v62 = vadd.f32 %v1345_v48, %v899_v26  ;;  %v4154_v37 = vadd.f32 %v1398_v20, %v952_v56 }
 0x1ce   :  { %v1347_v8 = vpop.f32.mrf.mxu0  ;;  %v1400_v32 = vpop.f32.mrf.mxu1 }
 0x1cf   :  { %4448 = vst [vmem:[#allocation18_spill] sm:$0xff] %v4152_v62  ;;  %4449 = vst [vmem:[#allocation19_spill] sm:$0xff] %v4154_v37  ;;  %v4156_v11 = vadd.f32 %v1347_v8, %v901_v57  ;;  %v4158_v21 = vadd.f32 %v1400_v32, %v954_v27 }
 0x1d0   :  { %v1349_v6 = vpop.f32.mrf.mxu0  ;;  %v1402_v30 = vpop.f32.mrf.mxu1 }
 0x1d1   :  { %4450 = vst [vmem:[#allocation20_spill] sm:$0xff] %v4156_v11  ;;  %4451 = vst [vmem:[#allocation21_spill] sm:$0xff] %v4158_v21  ;;  %v4160_v17 = vadd.f32 %v1349_v6, %v903_v29  ;;  %v4162_v52 = vadd.f32 %v1402_v30, %v956_v41  ;;  %v2399_v6 = vsub.s32 0, %v2398_v43  ;;  %v2407_v30 = vsub.s32 2, %v2398_v43  ;;  %v2395_v21 = vld [vmem:[%s4436_s2] sm:$0xff] }
 0x1d2   :  { %v1706_v24 = vpop.f32.mrf.mxu0  ;;  %v1759_v44 = vpop.f32.mrf.mxu1 }
 0x1d3   :  { %4452 = vst [vmem:[#allocation22_spill] sm:$0xff] %v4160_v17  ;;  %4453 = vst [vmem:[#allocation23_spill] sm:$0xff] %v4162_v52  ;;  %v2403_v52 = vsub.s32 1, %v2398_v43  ;;  %v2411_v17 = vsub.s32 3, %v2398_v43  ;;  %v4172_v37 = vrot.slane %v2395_v21, %v2399_v6  ;;  %v4174_v62 = vrot.slane %v2395_v21, %v2407_v30 }
 0x1d4   :  { %v1708_v59 = vpop.f32.mrf.mxu0  ;;  %v1761_v38 = vpop.f32.mrf.mxu1  ;;  %v1432_v6 = vadd.f32 %v4126_v10, %v4048_v51  ;;  %v1884_v30 = vadd.f32 %v1706_v24, %v4083_v14 }
 0x1d5   :  { %v4176_v60 = vrot.slane %v2395_v21, %v2403_v52  ;;  %v4178_v19 = vrot.slane %v2395_v21, %v2411_v17  ;;  %v1886_v52 = vadd.f32 %v1759_v44, %v4086_v61 }
 0x1d6   :  { %v1710_v26 = vpop.f32.mrf.mxu0  ;;  %v1763_v33 = vpop.f32.mrf.mxu1 }
 0x1d7   :  { %4456 = vst [vmem:[#allocation26_spill] sm:$0xff] %v4178_v19 }
 0x1d8   :  { %v1712_v56 = vpop.f32.mrf.mxu0  ;;  %v1765_v18 = vpop.f32.mrf.mxu1 }
 0x1da   :  { %v1716_v49 = vpop.f32.mrf.mxu0  ;;  %v1769_v0 = vpop.f32.mrf.mxu1 }
 0x1db   :  { %v1900_v51 = vadd.f32 %v1716_v49, %v4107_v50  ;;  %v1902_v14 = vadd.f32 %v1769_v0, %v4110_v45 }
 0x1dc   :  { %v1718_v57 = vpop.f32.mrf.mxu0  ;;  %v1771_v47 = vpop.f32.mrf.mxu1 }
 0x1dd   :  { %v4203_v10 = vadd.f32 %v1718_v57, %v4113_v55 }
 0x1de   :  { %v1720_v27 = vpop.f32.mrf.mxu0  ;;  %v1773_v25 = vpop.f32.mrf.mxu1 }
 0x1e0   :  { %v1722_v28 = vpop.f32.mrf.mxu0  ;;  %v1775_v36 = vpop.f32.mrf.mxu1 }
 0x1e2   :  { %v1812_v29 = vpop.f32.mrf.mxu0  ;;  %v1865_v53 = vpop.f32.mrf.mxu1 }
 0x1e3   :  { %v4164_v41 = vadd.f32 %v1812_v29, %v1409_v42  ;;  %v4166_v31 = vadd.f32 %v1865_v53, %v1411_v22  ;;  %v2415_v42 = vsub.s32 4, %v2398_v43  ;;  %v2423_v29 = vsub.s32 6, %v2398_v43 }
 0x1e4   :  { %v1814_v34 = vpop.f32.mrf.mxu0  ;;  %v1867_v5 = vpop.f32.mrf.mxu1  ;;  %v2419_v22 = vsub.s32 5, %v2398_v43  ;;  %v2427_v53 = vsub.s32 7, %v2398_v43  ;;  %v1430_v43 = vadd.f32 %v4124_v13, %v4045_v15  ;;  %v1895_v15 = vadd.f32 %v1765_v18, %v4104_v35 }
 0x1e5   :  { %4454 = vst [vmem:[#allocation24_spill] sm:$0xff] %v4164_v41  ;;  %4455 = vst [vmem:[#allocation25_spill] sm:$0xff] %v4166_v31  ;;  %v4180_v3 = vrot.slane %v2395_v21, %v2415_v42  ;;  %v4182_v40 = vrot.slane %v2395_v21, %v2423_v29  ;;  %v1885_v42 = vadd.f32 %v1708_v59, %v4089_v63 }
 0x1e6   :  { %v1816_v48 = vpop.f32.mrf.mxu0  ;;  %v1869_v20 = vpop.f32.mrf.mxu1  ;;  %v4184_v16 = vrot.slane %v2395_v21, %v2419_v22  ;;  %v4186_v46 = vrot.slane %v2395_v21, %v2427_v53  ;;  %v1887_v29 = vadd.f32 %v1761_v38, %v4092_v4  ;;  %v1892_v22 = vadd.f32 %v1710_v26, %v4095_v12  ;;  %v4459_v38 = vld [vmem:[#allocation14_spill] sm:$0xff] }
 0x1e7   :  { %v1894_v21 = vadd.f32 %v1763_v33, %v4098_v39  ;;  %v1893_v53 = vadd.f32 %v1712_v56, %v4101_v2  ;;  %v4206_v63 = vadd.f32 %v1771_v47, %v4116_v7  ;;  %v4209_v4 = vadd.f32 %v1720_v27, %v4119_v58  ;;  %v4457_v7 = vld [vmem:[#allocation12_spill] sm:$0xff]  ;;  %v4458_v58 = vld [vmem:[#allocation13_spill] sm:$0xff]  ;;  %v4460_v33 = vld [vmem:[#allocation15_spill] sm:$0xff] }
 0x1e8   :  { %v1818_v8 = vpop.f32.mrf.mxu0  ;;  %v1871_v32 = vpop.f32.mrf.mxu1  ;;  %v4212_v12 = vadd.f32 %v1773_v25, %v4122_v54  ;;  %v4214_v39 = vadd.f32 %v1722_v28, %v1430_v43  ;;  %v4216_v2 = vadd.f32 %v1775_v36, %v1432_v6  ;;  %v4219_v35 = vadd.f32 %v1814_v34, %v4131_v23  ;;  %v4461_v23 = vld [vmem:[#allocation16_spill] sm:$0xff]  ;;  %v4463_v36 = vld [vmem:[#allocation18_spill] sm:$0xff] }
 0x1e9   :  { %v4222_v50 = vadd.f32 %v1867_v5, %v4134_v1  ;;  %v4225_v24 = vadd.f32 %v1816_v48, %v4457_v7  ;;  %v4228_v44 = vadd.f32 %v1869_v20, %v4458_v58  ;;  %v4231_v26 = vadd.f32 %v1818_v8, %v4459_v38  ;;  %v4462_v1 = vld [vmem:[#allocation17_spill] sm:$0xff]  ;;  %v4464_v5 = vld [vmem:[#allocation19_spill] sm:$0xff]  ;;  %v4465_v20 = vld [vmem:[#allocation20_spill] sm:$0xff] }
 0x1ea   :  { %v1822_v31 = vpop.f32.mrf.mxu0  ;;  %v1875_v41 = vpop.f32.mrf.mxu1  ;;  %v4234_v56 = vadd.f32 %v1871_v32, %v4460_v33  ;;  %v4466_v8 = vld [vmem:[#allocation21_spill] sm:$0xff]  ;;  %v2501_v32 = vld [vmem:[#allocation5] sm:$0xff] }
 0x1eb   :  { %v4237_v18 = vadd.f32 %v1822_v31, %v4461_v23  ;;  %v4240_v49 = vadd.f32 %v1875_v41, %v4462_v1  ;;  %v2503_v43 = vld [vmem:[#allocation5 + $0x10] sm:$0xff] }
 0x1ec   :  { %v1824_v11 = vpop.f32.mrf.mxu0  ;;  %v1877_v9 = vpop.f32.mrf.mxu1 }
 0x1ed   :  { %v4245_v34 = vadd.f32 %v1824_v11, %v4463_v36  ;;  %v4248_v48 = vadd.f32 %v1877_v9, %v4464_v5  ;;  %v4470_v9 = vld [vmem:[#allocation23_spill] sm:$0xff] }
 0x1ee   :  { %v1826_v17 = vpop.f32.mrf.mxu0  ;;  %v1879_v19 = vpop.f32.mrf.mxu1 }
 0x1ef   :  { %v4251_v31 = vadd.f32 %v1826_v17, %v4465_v20  ;;  %v4254_v41 = vadd.f32 %v1879_v19, %v4466_v8  ;;  %v2502_v17 = vld [vmem:[#allocation5 + $0x8] sm:$0xff]  ;;  %v4266_v20 = vld [vmem:[#allocation5 + $0x40] sm:$0xff] }
 0x1f0   :  { %v1828_v13 = vpop.f32.mrf.mxu0  ;;  %v1881_v61 = vpop.f32.mrf.mxu1 }
 0x1f1   :  { %v4262_v58 = vadd.f32 %v1881_v61, %v4470_v9 }
 0x1f2   :  { %v2185_v45 = vpop.f32.mrf.mxu0  ;;  %v2238_v55 = vpop.f32.mrf.mxu1 }
 0x1f3   :  { %v2363_v54 = vadd.f32 %v2185_v45, %v1884_v30  ;;  %v2365_v59 = vadd.f32 %v2238_v55, %v1886_v52  ;;  %v4468_v55 = vld [vmem:[#allocation22_spill] sm:$0xff]  ;;  %4471 = vst [vmem:[#allocation13_spill] sm:$0xff] %v4262_v58 }
 0x1f4   :  { %v2187_v0 = vpop.f32.mrf.mxu0  ;;  %v2240_v57 = vpop.f32.mrf.mxu1  ;;  %v4259_v7 = vadd.f32 %v1828_v13, %v4468_v55 }
 0x1f5   :  { %v2437_v47 = vadd.f32 %v4172_v37, %v2363_v54  ;;  %v2439_v27 = vadd.f32 %v4174_v62, %v2365_v59  ;;  %v2364_v25 = vadd.f32 %v2187_v0, %v1885_v42  ;;  %v2366_v28 = vadd.f32 %v2240_v57, %v1887_v29  ;;  %v4467_v29 = vld [vmem:[#allocation26_spill] sm:$0xff] }
 0x1f6   :  { %v2189_v6 = vpop.f32.mrf.mxu0  ;;  %v2242_v30 = vpop.f32.mrf.mxu1  ;;  %4469 = vst [vmem:[#allocation12_spill] sm:$0xff] %v4259_v7  ;;  %v2504_v54 = vld [vmem:[#allocation5 + $0x18] sm:$0xff] }
 0x1f7   :  { %v2469_v52 = vmax.f32 %v2437_v47, 0.0  ;;  %v2471_v45 = vmax.f32 %v2439_v27, 0.0  ;;  %v2438_v42 = vadd.f32 %v4176_v60, %v2364_v25  ;;  %v2440_v11 = vadd.f32 %v4467_v29, %v2366_v28 }
 0x1f8   :  { %v2371_v19 = vadd.f32 %v2189_v6, %v1892_v22  ;;  %v2373_v59 = vadd.f32 %v2242_v30, %v1894_v21  ;;  %v2191_v38 = vpop.f32.mrf.mxu0  ;;  %v2244_v33 = vpop.f32.mrf.mxu1  ;;  %v4268_v22 = vld [vmem:[#allocation5 + $0x50] sm:$0xff] }
 0x1f9   :  { %v2517_v23 = vmul.f32 %v2501_v32, %v2469_v52  ;;  %v2519_v1 = vmul.f32 %v2503_v43, %v2471_v45  ;;  %v2470_v0 = vmax.f32 %v2438_v42, 0.0  ;;  %v2472_v57 = vmax.f32 %v2440_v11, 0.0 }
 0x1fa   :  { %v2445_v47 = vadd.f32 %v4172_v37, %v2371_v19  ;;  %v2447_v27 = vadd.f32 %v4174_v62, %v2373_v59  ;;  %v2372_v25 = vadd.f32 %v2191_v38, %v1893_v53  ;;  %v2374_v13 = vadd.f32 %v2244_v33, %v1895_v15  ;;  %v2195_v28 = vpop.f32.mrf.mxu0  ;;  %v2248_v36 = vpop.f32.mrf.mxu1  ;;  %v4272_v53 = vld [vmem:[#allocation5 + $0x48] sm:$0xff]  ;;  %v4274_v15 = vld [vmem:[#allocation5 + $0x58] sm:$0xff] }
 0x1fb   :  { %v2518_v61 = vmul.f32 %v2502_v17, %v2470_v0  ;;  %v2520_v5 = vmul.f32 %v2504_v54, %v2472_v57  ;;  %v2379_v21 = vadd.f32 %v2195_v28, %v1900_v51  ;;  %v2381_v8 = vadd.f32 %v2248_v36, %v1902_v14 }
 0x1fc   :  { %v2477_v6 = vmax.f32 %v2445_v47, 0.0  ;;  %v2479_v30 = vmax.f32 %v2447_v27, 0.0  ;;  %v2446_v52 = vadd.f32 %v4176_v60, %v2372_v25  ;;  %v2448_v45 = vadd.f32 %v4467_v29, %v2374_v13  ;;  %v2197_v42 = vpop.f32.mrf.mxu0  ;;  %v2250_v11 = vpop.f32.mrf.mxu1 }
 0x1fd   :  { %v2453_v55 = vadd.f32 %v4172_v37, %v2379_v21  ;;  %v2455_v9 = vadd.f32 %v4174_v62, %v2381_v8  ;;  %v2380_v19 = vadd.f32 %v2197_v42, %v4203_v10  ;;  %v2382_v51 = vadd.f32 %v2250_v11, %v4206_v63 }
 0x1fe   :  { %v2525_v14 = vmul.f32 %v4266_v20, %v2477_v6  ;;  %v2527_v59 = vmul.f32 %v4268_v22, %v2479_v30  ;;  %v2478_v38 = vmax.f32 %v2446_v52, 0.0  ;;  %v2480_v33 = vmax.f32 %v2448_v45, 0.0  ;;  %v2199_v0 = vpop.f32.mrf.mxu0  ;;  %v2252_v57 = vpop.f32.mrf.mxu1 }
 0x1ff   :  { %v2485_v47 = vmax.f32 %v2453_v55, 0.0  ;;  %v2487_v27 = vmax.f32 %v2455_v9, 0.0  ;;  %v2454_v25 = vadd.f32 %v4176_v60, %v2380_v19  ;;  %v2456_v13 = vadd.f32 %v4467_v29, %v2382_v51 }
 0x200   :  { %v2549_v28 = vmax.f32 %v2517_v23, %v2525_v14  ;;  %v2563_v36 = vmax.f32 %v2519_v1, %v2527_v59  ;;  %v2526_v10 = vmul.f32 %v4272_v53, %v2478_v38  ;;  %v2528_v63 = vmul.f32 %v4274_v15, %v2480_v33  ;;  %v2201_v21 = vpop.f32.mrf.mxu0  ;;  %v2254_v8 = vpop.f32.mrf.mxu1 }
 0x201   :  { %v2533_v6 = vmul.f32 %v2501_v32, %v2485_v47  ;;  %v2535_v30 = vmul.f32 %v2503_v43, %v2487_v27  ;;  %v2486_v52 = vmax.f32 %v2454_v25, 0.0  ;;  %v2488_v45 = vmax.f32 %v2456_v13, 0.0 }
 0x202   :  { %v2550_v42 = vrot.slane %v2549_v28, 4  ;;  %v2564_v11 = vrot.slane %v2563_v36, 4  ;;  %v2556_v55 = vmax.f32 %v2518_v61, %v2526_v10  ;;  %v2570_v9 = vmax.f32 %v2520_v5, %v2528_v63  ;;  %v2291_v58 = vpop.f32.mrf.mxu0  ;;  %v2344_v19 = vpop.f32.mrf.mxu1  ;;  %v4473_v10 = vld [vmem:[#allocation25_spill] sm:$0xff] }
 0x203   :  { %v2534_v7 = vmul.f32 %v2502_v17, %v2486_v52  ;;  %v2536_v51 = vmul.f32 %v2504_v54, %v2488_v45  ;;  %v2387_v23 = vadd.f32 %v2199_v0, %v4209_v4  ;;  %v2389_v1 = vadd.f32 %v2252_v57, %v4212_v12 }
 0x204   :  { %v2551_v14 = vmax.f32 %v2549_v28, %v2550_v42  ;;  %v2565_v59 = vmax.f32 %v2563_v36, %v2564_v11  ;;  %v2557_v38 = vrot.slane %v2556_v55, 4  ;;  %v2571_v33 = vrot.slane %v2570_v9, 4  ;;  %v2293_v32 = vpop.f32.mrf.mxu0  ;;  %v2346_v43 = vpop.f32.mrf.mxu1 }
 0x205   :  { %v2461_v47 = vadd.f32 %v4172_v37, %v2387_v23  ;;  %v2463_v27 = vadd.f32 %v4174_v62, %v2389_v1  ;;  %v2388_v61 = vadd.f32 %v2201_v21, %v4214_v39  ;;  %v2390_v5 = vadd.f32 %v2254_v8, %v4216_v2  ;;  %v4472_v39 = vld [vmem:[#allocation24_spill] sm:$0xff] }
 0x206   :  { %v2552_v17 = vrot.slane %v2551_v14, 2  ;;  %v2566_v54 = vrot.slane %v2565_v59, 2  ;;  %v4292_v25 = vmax.f32 %v2556_v55, %v2557_v38  ;;  %v4294_v4 = vmax.f32 %v2570_v9, %v2571_v33  ;;  %v2295_v12 = vpop.f32.mrf.mxu0  ;;  %v2348_v0 = vpop.f32.mrf.mxu1  ;;  %v4312_v1 = vld [vmem:[#allocation5 + $0x20] sm:$0xff] }
 0x207   :  { %v2493_v57 = vmax.f32 %v2461_v47, 0.0  ;;  %v2495_v13 = vmax.f32 %v2463_v27, 0.0  ;;  %v2462_v28 = vadd.f32 %v4176_v60, %v2388_v61  ;;  %v2464_v37 = vadd.f32 %v4467_v29, %v2390_v5 }
 0x208   :  { %v4298_v36 = vmax.f32 %v2551_v14, %v2552_v17  ;;  %v4300_v62 = vmax.f32 %v2565_v59, %v2566_v54  ;;  %v2367_v2 = vadd.f32 %v2291_v58, %v4472_v39  ;;  %v2369_v63 = vadd.f32 %v2344_v19, %v4473_v10  ;;  %v2297_v55 = vpop.f32.mrf.mxu0  ;;  %v2350_v9 = vpop.f32.mrf.mxu1 }
 0x209   :  { %v2541_v21 = vmul.f32 %v4266_v20, %v2493_v57  ;;  %v2543_v8 = vmul.f32 %v4268_v22, %v2495_v13  ;;  %v2494_v52 = vmax.f32 %v2462_v28, 0.0  ;;  %v2496_v45 = vmax.f32 %v2464_v37, 0.0  ;;  %v4314_v22 = vld [vmem:[#allocation5 + $0x30] sm:$0xff] }
 0x20a   :  { %v2441_v42 = vadd.f32 %v4180_v3, %v2367_v2  ;;  %v2443_v60 = vadd.f32 %v4182_v40, %v2369_v63  ;;  %v2368_v29 = vadd.f32 %v2293_v32, %v4219_v35  ;;  %v2370_v11 = vadd.f32 %v2346_v43, %v4222_v50  ;;  %v2301_v61 = vpop.f32.mrf.mxu0  ;;  %v2354_v5 = vpop.f32.mrf.mxu1 }
 0x20b   :  { %v2605_v23 = vmax.f32 %v2533_v6, %v2541_v21  ;;  %v2619_v58 = vmax.f32 %v2535_v30, %v2543_v8  ;;  %v2542_v19 = vmul.f32 %v4272_v53, %v2494_v52  ;;  %v2544_v20 = vmul.f32 %v4274_v15, %v2496_v45  ;;  %v4318_v6 = vld [vmem:[#allocation5 + $0x28] sm:$0xff]  ;;  %v4320_v30 = vld [vmem:[#allocation5 + $0x38] sm:$0xff] }
 0x20c   :  { %v2473_v14 = vmax.f32 %v2441_v42, 0.0  ;;  %v2475_v59 = vmax.f32 %v2443_v60, 0.0  ;;  %v2442_v38 = vadd.f32 %v4184_v16, %v2368_v29  ;;  %v2444_v35 = vadd.f32 %v4186_v46, %v2370_v11  ;;  %v2303_v42 = vpop.f32.mrf.mxu0  ;;  %v2356_v60 = vpop.f32.mrf.mxu1 }
 0x20d   :  { %v2606_v33 = vrot.slane %v2605_v23, 4  ;;  %v2620_v50 = vrot.slane %v2619_v58, 4  ;;  %v2612_v32 = vmax.f32 %v2534_v7, %v2542_v19  ;;  %v2626_v43 = vmax.f32 %v2536_v51, %v2544_v20 }
 0x20e   :  { %v2521_v53 = vmul.f32 %v4312_v1, %v2473_v14  ;;  %v2523_v15 = vmul.f32 %v4314_v22, %v2475_v59  ;;  %v2474_v47 = vmax.f32 %v2442_v38, 0.0  ;;  %v2476_v27 = vmax.f32 %v2444_v35, 0.0 }
 0x20f   :  { %v2607_v17 = vmax.f32 %v2605_v23, %v2606_v33  ;;  %v2621_v54 = vmax.f32 %v2619_v58, %v2620_v50  ;;  %v2613_v57 = vrot.slane %v2612_v32, 4  ;;  %v2627_v13 = vrot.slane %v2626_v43, 4  ;;  %v2305_v33 = vpop.f32.mrf.mxu0  ;;  %v2358_v50 = vpop.f32.mrf.mxu1 }
 0x210   :  { %v2522_v28 = vmul.f32 %v4318_v6, %v2474_v47  ;;  %v2524_v7 = vmul.f32 %v4320_v30, %v2476_v27  ;;  %v2375_v51 = vadd.f32 %v2295_v12, %v4225_v24  ;;  %v2377_v37 = vadd.f32 %v2348_v0, %v4228_v44  ;;  %v4340_v44 = vld [vmem:[#allocation5 + $0x60] sm:$0xff]  ;;  %v4342_v12 = vld [vmem:[#allocation5 + $0x70] sm:$0xff] }
 0x211   :  { %v2608_v39 = vrot.slane %v2607_v17, 2  ;;  %v2622_v2 = vrot.slane %v2621_v54, 2  ;;  %v4328_v10 = vmax.f32 %v2612_v32, %v2613_v57  ;;  %v4330_v63 = vmax.f32 %v2626_v43, %v2627_v13 }
 0x212   :  { %v2449_v21 = vadd.f32 %v4180_v3, %v2375_v51  ;;  %v2451_v8 = vadd.f32 %v4182_v40, %v2377_v37  ;;  %v2376_v52 = vadd.f32 %v2297_v55, %v4231_v26  ;;  %v2378_v45 = vadd.f32 %v2350_v9, %v4234_v56  ;;  %v4348_v55 = vld [vmem:[#allocation5 + $0x68] sm:$0xff]  ;;  %v4350_v9 = vld [vmem:[#allocation5 + $0x78] sm:$0xff] }
 0x213   :  { %v4336_v29 = vmax.f32 %v2607_v17, %v2608_v39  ;;  %v4338_v24 = vmax.f32 %v2621_v54, %v2622_v2  ;;  %v2383_v0 = vadd.f32 %v2301_v61, %v4237_v18  ;;  %v2385_v11 = vadd.f32 %v2354_v5, %v4240_v49 }
 0x214   :  { %v2481_v23 = vmax.f32 %v2449_v21, 0.0  ;;  %v2483_v58 = vmax.f32 %v2451_v8, 0.0  ;;  %v2450_v26 = vadd.f32 %v4184_v16, %v2376_v52  ;;  %v2452_v56 = vadd.f32 %v4186_v46, %v2378_v45  ;;  %v2307_v21 = vpop.f32.mrf.mxu0  ;;  %v2360_v8 = vpop.f32.mrf.mxu1 }
 0x215   :  { %v2457_v19 = vadd.f32 %v4180_v3, %v2383_v0  ;;  %v2459_v20 = vadd.f32 %v4182_v40, %v2385_v11  ;;  %v2384_v14 = vadd.f32 %v2303_v42, %v4245_v34  ;;  %v2386_v18 = vadd.f32 %v2356_v60, %v4248_v48 }
 0x216   :  { %v2529_v49 = vmul.f32 %v4340_v44, %v2481_v23  ;;  %v2531_v59 = vmul.f32 %v4342_v12, %v2483_v58  ;;  %v2482_v38 = vmax.f32 %v2450_v26, 0.0  ;;  %v2484_v35 = vmax.f32 %v2452_v56, 0.0  ;;  %v4475_v23 = vld [vmem:[#allocation13_spill] sm:$0xff] }
 0x217   :  { %v2489_v32 = vmax.f32 %v2457_v19, 0.0  ;;  %v2491_v43 = vmax.f32 %v2459_v20, 0.0  ;;  %v2458_v47 = vadd.f32 %v4184_v16, %v2384_v14  ;;  %v2460_v27 = vadd.f32 %v4186_v46, %v2386_v18 }
 0x218   :  { %v2577_v61 = vmax.f32 %v2521_v53, %v2529_v49  ;;  %v2591_v5 = vmax.f32 %v2523_v15, %v2531_v59  ;;  %v2530_v34 = vmul.f32 %v4348_v55, %v2482_v38  ;;  %v2532_v48 = vmul.f32 %v4350_v9, %v2484_v35 }
 0x219   :  { %v2537_v17 = vmul.f32 %v4312_v1, %v2489_v32  ;;  %v2539_v54 = vmul.f32 %v4314_v22, %v2491_v43  ;;  %v2490_v57 = vmax.f32 %v2458_v47, 0.0  ;;  %v2492_v13 = vmax.f32 %v2460_v27, 0.0 }
 0x21a   :  { %v2578_v51 = vrot.slane %v2577_v61, 4  ;;  %v2592_v37 = vrot.slane %v2591_v5, 4  ;;  %v2584_v39 = vmax.f32 %v2522_v28, %v2530_v34  ;;  %v2598_v2 = vmax.f32 %v2524_v7, %v2532_v48  ;;  %v4474_v7 = vld [vmem:[#allocation12_spill] sm:$0xff] }
 0x21b   :  { %v2538_v52 = vmul.f32 %v4318_v6, %v2490_v57  ;;  %v2540_v53 = vmul.f32 %v4320_v30, %v2492_v13  ;;  %v2391_v15 = vadd.f32 %v2305_v33, %v4251_v31  ;;  %v2393_v45 = vadd.f32 %v2358_v50, %v4254_v41 }
 0x21c   :  { %v4368_v42 = vmax.f32 %v2577_v61, %v2578_v51  ;;  %v4370_v1 = vmax.f32 %v2591_v5, %v2592_v37  ;;  %v2585_v22 = vrot.slane %v2584_v39, 4  ;;  %v2599_v60 = vrot.slane %v2598_v2, 4 }
 0x21d   :  { %v2465_v0 = vadd.f32 %v4180_v3, %v2391_v15  ;;  %v2467_v28 = vadd.f32 %v4182_v40, %v2393_v45  ;;  %v2392_v11 = vadd.f32 %v2307_v21, %v4474_v7  ;;  %v2394_v6 = vadd.f32 %v2360_v8, %v4475_v23 }
 0x21e   :  { %v2580_v30 = vrot.slane %v4368_v42, 2  ;;  %v2594_v31 = vrot.slane %v4370_v1, 2  ;;  %v4378_v58 = vmax.f32 %v2584_v39, %v2585_v22  ;;  %v4380_v41 = vmax.f32 %v2598_v2, %v2599_v60 }
 0x21f   :  { %v2497_v26 = vmax.f32 %v2465_v0, 0.0  ;;  %v2499_v56 = vmax.f32 %v2467_v28, 0.0  ;;  %v2466_v19 = vadd.f32 %v4184_v16, %v2392_v11  ;;  %v2468_v3 = vadd.f32 %v4186_v46, %v2394_v6  ;;  %v2740_v0 = vld [vmem:[#allocation7 + $0x278] sm:$0xff] }
 0x220   :  { %v2559_v40 = vrot.slane %v4292_v25, 2  ;;  %v2615_v20 = vrot.slane %v4328_v10, 2  ;;  %v2573_v14 = vrot.slane %v4294_v4, 2  ;;  %v2629_v18 = vrot.slane %v4330_v63, 2 }
 0x221   :  { %v2545_v49 = vmul.f32 %v4340_v44, %v2497_v26  ;;  %v2547_v59 = vmul.f32 %v4342_v12, %v2499_v56  ;;  %v2498_v38 = vmax.f32 %v2466_v19, 0.0  ;;  %v2500_v35 = vmax.f32 %v2468_v3, 0.0  ;;  %v2772_v19 = vld [vmem:[#allocation7 + $0x378] sm:$0xff]  ;;  %v2739_v3 = vld [vmem:[#allocation7 + $0x270] sm:$0xff] }
 0x222   :  { %v2560_v33 = vmax.f32 %v4292_v25, %v2559_v40  ;;  %v2616_v16 = vmax.f32 %v4328_v10, %v2615_v20  ;;  %v2574_v46 = vmax.f32 %v4294_v4, %v2573_v14  ;;  %v2630_v50 = vmax.f32 %v4330_v63, %v2629_v18 }
 0x223   :  { %v2633_v32 = vmax.f32 %v2537_v17, %v2545_v49  ;;  %v2647_v43 = vmax.f32 %v2539_v54, %v2547_v59  ;;  %v2546_v47 = vmul.f32 %v4348_v55, %v2498_v38  ;;  %v2548_v27 = vmul.f32 %v4350_v9, %v2500_v35  ;;  %v2754_v59 = vld [vmem:[#allocation7 + $0x2e8] sm:$0xff] }
 0x224   :  { %v2561_v61 = vrot.slane %v2560_v33, 1  ;;  %v2617_v44 = vrot.slane %v2616_v16, 1  ;;  %v2575_v5 = vrot.slane %v2574_v46, 1  ;;  %v2631_v12 = vrot.slane %v2630_v50, 1  ;;  %v2738_v35 = vld [vmem:[#allocation7 + $0x268] sm:$0xff] }
 0x225   :  { %v2634_v34 = vrot.slane %v2633_v32, 4  ;;  %v2648_v48 = vrot.slane %v2647_v43, 4  ;;  %v2640_v57 = vmax.f32 %v2538_v52, %v2546_v47  ;;  %v2654_v25 = vmax.f32 %v2540_v53, %v2548_v27  ;;  %v2770_v27 = vld [vmem:[#allocation7 + $0x368] sm:$0xff] }
 0x226   :  { %v2562_v13 = vmax.f32 %v2560_v33, %v2561_v61  ;;  %v2618_v10 = vmax.f32 %v2616_v16, %v2617_v44  ;;  %v2576_v51 = vmax.f32 %v2574_v46, %v2575_v5  ;;  %v2632_v4 = vmax.f32 %v2630_v50, %v2631_v12  ;;  %v2786_v46 = vld [vmem:[#allocation7 + $0x3e8] sm:$0xff]  ;;  %v2753_v50 = vld [vmem:[#allocation7 + $0x2e0] sm:$0xff]  ;;  %v2752_v12 = vld [vmem:[#allocation7 + $0x2d8] sm:$0xff] }
 0x227   :  { %v2635_v37 = vmax.f32 %v2633_v32, %v2634_v34  ;;  %v2649_v63 = vmax.f32 %v2647_v43, %v2648_v48  ;;  %v2641_v17 = vrot.slane %v2640_v57, 4  ;;  %v2655_v54 = vrot.slane %v2654_v25, 4  ;;  %v2737_v61 = vld [vmem:[#allocation7 + $0x260] sm:$0xff] }
 0x228   :  { %v2814_v55 = vsel %vm2812_vm6, %v2618_v10, %v2562_v13  ;;  %v2816_v9 = vsel %vm2812_vm6, %v2632_v4, %v2576_v51  ;;  %v2554_v39 = vrot.slane %v4298_v36, 1  ;;  %v2610_v2 = vrot.slane %v4336_v29, 1  ;;  %v2785_v5 = vld [vmem:[#allocation7 + $0x3e0] sm:$0xff]  ;;  %v2736_v10 = vld [vmem:[#allocation7 + $0x258] sm:$0xff] }
 0x229   :  { %v2636_v21 = vrot.slane %v2635_v37, 2  ;;  %v2650_v8 = vrot.slane %v2649_v63, 2  ;;  %v2642_v52 = vmax.f32 %v2640_v57, %v2641_v17  ;;  %v2656_v53 = vmax.f32 %v2654_v25, %v2655_v54  ;;  %2893 = vmatprep.mubr.f32.mxu0 %v2814_v55  ;;  %2963 = vmatprep.mubr.f32.mxu1 %v2816_v9  ;;  %v2769_v13 = vld [vmem:[#allocation7 + $0x360] sm:$0xff]  ;;  %v2768_v9 = vld [vmem:[#allocation7 + $0x358] sm:$0xff] }
 0x22a   :  { %v2555_v15 = vmax.f32 %v4298_v36, %v2554_v39  ;;  %v2611_v45 = vmax.f32 %v4336_v29, %v2610_v2  ;;  %v2568_v22 = vrot.slane %v4300_v62, 1  ;;  %v2624_v60 = vrot.slane %v4338_v24, 1  ;;  %v2755_v36 = vld [vmem:[#allocation7 + $0x2f0] sm:$0xff] }
 0x22b   :  { %v2587_v28 = vrot.slane %v4378_v58, 2  ;;  %v2643_v7 = vrot.slane %v2642_v52, 2  ;;  %v2601_v11 = vrot.slane %v4380_v41, 2  ;;  %v2657_v23 = vrot.slane %v2656_v53, 2  ;;  %v2735_v39 = vld [vmem:[#allocation7 + $0x250] sm:$0xff] }
 0x22c   :  { %v2813_v6 = vsel %vm2812_vm6, %v2611_v45, %v2555_v15  ;;  %v2569_v26 = vmax.f32 %v4300_v62, %v2568_v22  ;;  %v2625_v56 = vmax.f32 %v4338_v24, %v2624_v60  ;;  %v2581_v29 = vmax.f32 %v4368_v42, %v2580_v30  ;;  %v2787_v62 = vld [vmem:[#allocation7 + $0x3f0] sm:$0xff]  ;;  %v2782_v15 = vld [vmem:[#allocation7 + $0x3c8] sm:$0xff]  ;;  %v2749_v45 = vld [vmem:[#allocation7 + $0x2c0] sm:$0xff] }
 0x22d   :  { %2894 = vmatmul.mubr.f32.vlgmr.msra.gmra.mxu0 %v2813_v6  ;;  %v2588_v40 = vmax.f32 %v4378_v58, %v2587_v28  ;;  %v2644_v20 = vmax.f32 %v2642_v52, %v2643_v7  ;;  %v2602_v14 = vmax.f32 %v4380_v41, %v2601_v11  ;;  %v2658_v18 = vmax.f32 %v2656_v53, %v2657_v23  ;;  %v2771_v30 = vld [vmem:[#allocation7 + $0x370] sm:$0xff]  ;;  %v2734_v53 = vld [vmem:[#allocation7 + $0x248] sm:$0xff]  ;;  %v2733_v60 = vld [vmem:[#allocation7 + $0x240] sm:$0xff] }
 0x22e   :  { %v2815_v49 = vsel %vm2812_vm6, %v2625_v56, %v2569_v26  ;;  %3418 = vmatpush3.msra.mxu0 %v2740_v0  ;;  %v2582_v24 = vrot.slane %v2581_v29, 1  ;;  %v2637_v38 = vmax.f32 %v2635_v37, %v2636_v21  ;;  %v2595_v42 = vmax.f32 %v4370_v1, %v2594_v31  ;;  %v2784_v37 = vld [vmem:[#allocation7 + $0x3d8] sm:$0xff]  ;;  %v2783_v2 = vld [vmem:[#allocation7 + $0x3d0] sm:$0xff]  ;;  %v2750_v21 = vld [vmem:[#allocation7 + $0x2c8] sm:$0xff] }
 0x22f   :  { %2964 = vmatmul.mubr.f32.vlgmr.msra.gmra.mxu1 %v2815_v49  ;;  %3419 = vmatprep.subr.mxu0 %v2755_v36  ;;  %v2589_v58 = vrot.slane %v2588_v40, 1  ;;  %v2645_v33 = vrot.slane %v2644_v20, 1  ;;  %v2603_v16 = vrot.slane %v2602_v14, 1  ;;  %v2659_v41 = vrot.slane %v2658_v18, 1  ;;  %v2767_v52 = vld [vmem:[#allocation7 + $0x350] sm:$0xff]  ;;  %v2766_v22 = vld [vmem:[#allocation7 + $0x348] sm:$0xff] }
 0x230   :  { %3453 = vmatpush3.msra.mxu1 %v2772_v19  ;;  %3420 = vmatpush3.msra.mxu0 %v2739_v3  ;;  %v2638_v32 = vrot.slane %v2637_v38, 1  ;;  %v2596_v43 = vrot.slane %v2595_v42, 1  ;;  %v2651_v47 = vmax.f32 %v2649_v63, %v2650_v8  ;;  %v2583_v44 = vmax.f32 %v2581_v29, %v2582_v24  ;;  %v2751_v63 = vld [vmem:[#allocation7 + $0x2d0] sm:$0xff]  ;;  %v2781_v0 = vld [vmem:[#allocation7 + $0x3c0] sm:$0xff]  ;;  %v2748_v28 = vld [vmem:[#allocation7 + $0x2b8] sm:$0xff] }
 0x231   :  { %3454 = vmatprep.subr.mxu1 %v2787_v62  ;;  %3421 = vmatprep.subr.mxu0 %v2754_v59  ;;  %v2590_v1 = vmax.f32 %v2588_v40, %v2589_v58  ;;  %v2646_v31 = vmax.f32 %v2644_v20, %v2645_v33  ;;  %v2604_v34 = vmax.f32 %v2602_v14, %v2603_v16  ;;  %v2765_v7 = vld [vmem:[#allocation7 + $0x340] sm:$0xff]  ;;  %v2780_v11 = vld [vmem:[#allocation7 + $0x3b8] sm:$0xff]  ;;  %v2747_v26 = vld [vmem:[#allocation7 + $0x2b0] sm:$0xff] }
 0x232   :  { %3455 = vmatpush3.msra.mxu1 %v2771_v30  ;;  %3422 = vmatpush3.msra.mxu0 %v2738_v35  ;;  %v2660_v48 = vmax.f32 %v2658_v18, %v2659_v41  ;;  %v2639_v57 = vmax.f32 %v2637_v38, %v2638_v32  ;;  %v2652_v25 = vrot.slane %v2651_v47, 1  ;;  %v2597_v4 = vmax.f32 %v2595_v42, %v2596_v43  ;;  %v2732_v23 = vld [vmem:[#allocation7 + $0x238] sm:$0xff]  ;;  %v2779_v56 = vld [vmem:[#allocation7 + $0x3b0] sm:$0xff]  ;;  %v2746_v19 = vld [vmem:[#allocation7 + $0x2a8] sm:$0xff] }
 0x233   :  { %3456 = vmatprep.subr.mxu1 %v2786_v46  ;;  %3423 = vmatprep.subr.mxu0 %v2753_v50  ;;  %v2818_v51 = vsel %vm2812_vm6, %v2646_v31, %v2590_v1  ;;  %v2764_v6 = vld [vmem:[#allocation7 + $0x338] sm:$0xff]  ;;  %v2731_v36 = vld [vmem:[#allocation7 + $0x230] sm:$0xff]  ;;  %v2778_v3 = vld [vmem:[#allocation7 + $0x3a8] sm:$0xff] }
 0x234   :  { %3457 = vmatpush3.msra.mxu1 %v2770_v27  ;;  %3424 = vmatpush3.msra.mxu0 %v2737_v61  ;;  %v2820_v17 = vsel %vm2812_vm6, %v2660_v48, %v2604_v34  ;;  %v4421_v54 = vsel %vm2812_vm6, %v2639_v57, %v2583_v44  ;;  %v2653_v55 = vmax.f32 %v2651_v47, %v2652_v25  ;;  %v2763_v29 = vld [vmem:[#allocation7 + $0x330] sm:$0xff]  ;;  %v2730_v40 = vld [vmem:[#allocation7 + $0x228] sm:$0xff]  ;;  %v2745_v14 = vld [vmem:[#allocation7 + $0x2a0] sm:$0xff] }
 0x235   :  { %3458 = vmatprep.subr.mxu1 %v2785_v5  ;;  %3425 = vmatprep.subr.mxu0 %v2752_v12  ;;  %v2762_v20 = vld [vmem:[#allocation7 + $0x328] sm:$0xff]  ;;  %v2777_v18 = vld [vmem:[#allocation7 + $0x3a0] sm:$0xff]  ;;  %v2744_v59 = vld [vmem:[#allocation7 + $0x298] sm:$0xff] }
 0x236   :  { %3459 = vmatpush3.msra.mxu1 %v2769_v13  ;;  %3426 = vmatpush3.msra.mxu0 %v2736_v10  ;;  %v4424_v8 = vsel %vm2812_vm6, %v2653_v55, %v2597_v4  ;;  %v2729_v49 = vld [vmem:[#allocation7 + $0x220] sm:$0xff]  ;;  %v2776_v24 = vld [vmem:[#allocation7 + $0x398] sm:$0xff]  ;;  %v2743_v30 = vld [vmem:[#allocation7 + $0x290] sm:$0xff] }
 0x237   :  { %3460 = vmatprep.subr.mxu1 %v2784_v37  ;;  %3427 = vmatprep.subr.mxu0 %v2751_v63  ;;  %v2761_v62 = vld [vmem:[#allocation7 + $0x320] sm:$0xff]  ;;  %v2728_v38 = vld [vmem:[#allocation7 + $0x218] sm:$0xff]  ;;  %v2775_v35 = vld [vmem:[#allocation7 + $0x390] sm:$0xff] }
 0x238   :  { %3461 = vmatpush3.msra.mxu1 %v2768_v9  ;;  %3428 = vmatpush3.msra.mxu0 %v2735_v39  ;;  %v2760_v42 = vld [vmem:[#allocation7 + $0x318] sm:$0xff]  ;;  %v2727_v58 = vld [vmem:[#allocation7 + $0x210] sm:$0xff]  ;;  %v2742_v16 = vld [vmem:[#allocation7 + $0x288] sm:$0xff] }
 0x239   :  { %3462 = vmatprep.subr.mxu1 %v2783_v2  ;;  %3429 = vmatprep.subr.mxu0 %v2750_v21  ;;  %v2759_v33 = vld [vmem:[#allocation7 + $0x310] sm:$0xff]  ;;  %v2774_v41 = vld [vmem:[#allocation7 + $0x388] sm:$0xff]  ;;  %v2741_v32 = vld [vmem:[#allocation7 + $0x280] sm:$0xff] }
 0x23a   :  { %3463 = vmatpush3.msra.mxu1 %v2767_v52  ;;  %3430 = vmatpush3.msra.mxu0 %v2734_v53  ;;  %v2726_v46 = vld [vmem:[#allocation7 + $0x208] sm:$0xff]  ;;  %v2773_v43 = vld [vmem:[#allocation7 + $0x380] sm:$0xff] }
 0x23b   :  { %3464 = vmatprep.subr.mxu1 %v2782_v15  ;;  %3431 = vmatprep.subr.mxu0 %v2749_v45  ;;  %v2758_v50 = vld [vmem:[#allocation7 + $0x308] sm:$0xff]  ;;  %v2725_v47 = vld [vmem:[#allocation7 + $0x200] sm:$0xff] }
 0x23c   :  { %3465 = vmatpush3.msra.mxu1 %v2766_v22  ;;  %3432 = vmatpush3.msra.mxu0 %v2733_v60  ;;  %v2757_v27 = vld [vmem:[#allocation7 + $0x300] sm:$0xff] }
 0x23d   :  { %3466 = vmatprep.subr.mxu1 %v2781_v0  ;;  %3433 = vmatprep.subr.mxu0 %v2748_v28  ;;  %v3346_v5 = vld [vmem:[%s4439_s5] ss:$0 sm:$0xff] }
 0x23e   :  { %3467 = vmatpush3.msra.mxu1 %v2765_v7  ;;  %3033 = vmatprep.mubr.f32.mxu0 %v2818_v51 }
 0x23f   :  { %3468 = vmatprep.subr.mxu1 %v2780_v11  ;;  %3103 = vmatprep.mubr.f32.mxu1 %v2820_v17 }
 0x240   :  { %3434 = vmatpush3.msra.mxu0 %v2732_v23  ;;  %3469 = vmatpush3.msra.mxu1 %v2764_v6 }
 0x241   :  { %3435 = vmatprep.subr.mxu0 %v2747_v26  ;;  %3470 = vmatprep.subr.mxu1 %v2779_v56 }
 0x242   :  { %3436 = vmatpush3.msra.mxu0 %v2731_v36  ;;  %3471 = vmatpush3.msra.mxu1 %v2763_v29 }
 0x243   :  { %3437 = vmatprep.subr.mxu0 %v2746_v19  ;;  %3472 = vmatprep.subr.mxu1 %v2778_v3 }
 0x244   :  { %3438 = vmatpush3.msra.mxu0 %v2730_v40  ;;  %3473 = vmatpush3.msra.mxu1 %v2762_v20 }
 0x245   :  { %3439 = vmatprep.subr.mxu0 %v2745_v14  ;;  %3474 = vmatprep.subr.mxu1 %v2777_v18 }
 0x246   :  { %3440 = vmatpush3.msra.mxu0 %v2729_v49  ;;  %3475 = vmatpush3.msra.mxu1 %v2761_v62 }
 0x247   :  { %3441 = vmatprep.subr.mxu0 %v2744_v59  ;;  %3476 = vmatprep.subr.mxu1 %v2776_v24 }
 0x248   :  { %3442 = vmatpush3.msra.mxu0 %v2728_v38  ;;  %3477 = vmatpush3.msra.mxu1 %v2760_v42 }
 0x249   :  { %3443 = vmatprep.subr.mxu0 %v2743_v30  ;;  %3478 = vmatprep.subr.mxu1 %v2775_v35 }
 0x24a   :  { %3444 = vmatpush3.msra.mxu0 %v2727_v58  ;;  %3479 = vmatpush3.msra.mxu1 %v2759_v33 }
 0x24b   :  { %3445 = vmatprep.subr.mxu0 %v2742_v16  ;;  %3480 = vmatprep.subr.mxu1 %v2774_v41 }
 0x24c   :  { %3446 = vmatpush3.msra.mxu0 %v2726_v46  ;;  %3481 = vmatpush3.msra.mxu1 %v2758_v50 }
 0x24d   :  { %3447 = vmatprep.subr.mxu0 %v2741_v32  ;;  %3482 = vmatprep.subr.mxu1 %v2773_v43 }
 0x24e   :  { %3448 = vmatpush3.msra.mxu0 %v2725_v47  ;;  %3483 = vmatpush3.msra.mxu1 %v2757_v27 }
 0x24f   :  { %3034 = vmatmul.mubr.f32.vlgmr.msra.gmra.mxu0 %v4421_v54  ;;  %3104 = vmatmul.mubr.f32.vlgmr.msra.gmra.mxu1 %v4424_v8 }
 0x2ed   :  { %v3379_v61 = vpop.f32.mrf.mxu0 }
 0x2ef   :  { %v3380_v1 = vpop.f32.mrf.mxu0  ;;  %v3414_v31 = vpop.f32.mrf.mxu1 }
 0x2f0   :  { %v3381_v44 = vadd.f32 %v3380_v1, %v3379_v61 }
 0x2f1   :  { %v3415_v12 = vpop.f32.mrf.mxu1 }
 0x2f2   :  { %v2896_v34 = vadd.f32 %v3381_v44, %v3346_v5  ;;  %v3416_v25 = vadd.f32 %v3415_v12, %v3414_v31 }
 0x2f4   :  { %v2966_v51 = vadd.f32 %v3416_v25, %v2896_v34 }
 0x30f   :  { %v3449_v48 = vpop.f32.mrf.mxu0  ;;  %v3484_v57 = vpop.f32.mrf.mxu1 }
 0x311   :  { %v3450_v13 = vpop.f32.mrf.mxu0  ;;  %v3485_v10 = vpop.f32.mrf.mxu1 }
 0x312   :  { %v3451_v4 = vadd.f32 %v3450_v13, %v3449_v48  ;;  %v3486_v63 = vadd.f32 %v3485_v10, %v3484_v57 }
 0x314   :  { %v3036_v37 = vadd.f32 %v3451_v4, %v2966_v51 }
 0x316   :  { %v3106_v17 = vadd.f32 %v3486_v63, %v3036_v37 }
 0x318   :  { %3109 = vst [vmem:[#allocation8] sm:$0x3] %v3106_v17 }
 0x319   :  { %3572 = shalt.err (!%p3569_p5)
}
 0x31a   :  { %3119 = dma.vmem_to_hbm [thread:$0]  %s3117_s30, 32, %s4440_s6, [#allocation4]  }
 0x31b   :  { %3585 = dma.done.wait [#allocation4], 32  }
 0x31c   :  { %3586 = vsyncadd [#allocation4], 4294967264 }
 0x31d   :  { %3123 = vsyncpa [#allocation3], 1 }
 0x31e   :  { %3124 = vsyncpa [#allocation6], 1 }
 0x31f   :  { %3125 = vsyncpa [#allocation4], 1 }

</bundles_post_ra>
